<compile_context>
chip_gen: v5e
topology: v5e:2x2
jax: 0.10.0
libtpu: 0.0.40
codegen_flags: <defaults>
</compile_context>

<pallas_src>
import jax
import jax.numpy as jnp
from jax.experimental import pallas as pl
from jax.experimental.pallas import tpu as pltpu


# ----------------------------------------------------------------------------
# Fused TCNN forward kernel (one grid step = one block of `block_b` batch rows)
#   xpad_ref : (block_b, L+2, Cin)  input, channel-last, zero-padded
#   w1_ref   : (3, Cin, C1)         conv1 weights, BN scale folded in
#   w2_ref   : (3, C1, C2)          conv2 weights, BN scale folded in
#   wqkv_ref : (D, 3D)              fused Q/K/V projection (D == C2)
#   fc1w_ref : (L, D, H)            fc1 packed in torch channel-major order
#   fc2w_ref : (H, 128)             fc2, zero-padded to 128 lanes
#   bias_ref : (8, 128)             rows: shift1 | shift2 | bqkv | fc1_b | fc2_b
#   o_ref    : (block_b, 128)       logits (only lanes [:2] meaningful)
# ----------------------------------------------------------------------------
def _tcnn_fused_kernel(xpad_ref, w1_ref, w2_ref, wqkv_ref, fc1w_ref, fc2w_ref,
                       bias_ref, o_ref):
    Bb, Lp, Cin = xpad_ref.shape
    L = Lp - 2
    C1 = w1_ref.shape[2]
    C2 = w2_ref.shape[2]
    D = C2
    H = fc1w_ref.shape[2]
    M = Bb * L

    # Per-channel shifts / biases, packed in one (8, 128) slab (single DMA).
    shift1 = bias_ref[0:1, 0:C1]          # beta1 + (conv1_b - mean1) * scale1
    shift2 = bias_ref[1:2, 0:C2]
    bqkv = bias_ref[2:3, 0:3 * D]
    fc1_b = bias_ref[3:4, 0:H]
    fc2_b = bias_ref[4:5, :]              # (1, 128), zero-padded

    xp = xpad_ref[...]                    # (Bb, L+2, Cin)

    # ---- conv1 (+ folded BN) + ReLU : 3 accumulated tap matmuls ------------
    h1 = jnp.dot(xp[:, 0:L, :].reshape(M, Cin), w1_ref[0],
                 preferred_element_type=jnp.float32)
    h1 += jnp.dot(xp[:, 1:L + 1, :].reshape(M, Cin), w1_ref[1],
                  preferred_element_type=jnp.float32)
    h1 += jnp.dot(xp[:, 2:L + 2, :].reshape(M, Cin), w1_ref[2],
                  preferred_element_type=jnp.float32)
    h1 = jnp.maximum(h1 + shift1, 0.0)                       # (M, C1)
    h1_3d = h1.reshape(Bb, L, C1)

    # ---- conv2 (+ folded BN) + ReLU : in-register zero padding -------------
    zrow = jnp.zeros((Bb, 1, C1), jnp.float32)
    a0 = jnp.concatenate([zrow, h1_3d[:, :L - 1, :]], axis=1).reshape(M, C1)
    a2 = jnp.concatenate([h1_3d[:, 1:, :], zrow], axis=1).reshape(M, C1)
    h2 = jnp.dot(a0, w2_ref[0], preferred_element_type=jnp.float32)
    h2 += jnp.dot(h1, w2_ref[1], preferred_element_type=jnp.float32)
    h2 += jnp.dot(a2, w2_ref[2], preferred_element_type=jnp.float32)
    h2 = jnp.maximum(h2 + shift2, 0.0)                       # (M, C2)

    # ---- self-attention (fused QKV projection) -----------------------------
    qkv = jnp.dot(h2, wqkv_ref[...],
                  preferred_element_type=jnp.float32) + bqkv
    q = qkv[:, 0:D].reshape(Bb, L, D)
    k = qkv[:, D:2 * D].reshape(Bb, L, D)
    v = qkv[:, 2 * D:3 * D].reshape(Bb, L, D)

    s = jnp.einsum("bqd,bkd->bqk", q, k,
                   preferred_element_type=jnp.float32) * (float(D) ** -0.5)
    s = s - jnp.max(s, axis=-1, keepdims=True)
    p = jnp.exp(s)
    a = p / jnp.sum(p, axis=-1, keepdims=True)                # exact softmax
    h3 = jnp.einsum("bqk,bkd->bqd", a, v,
                    preferred_element_type=jnp.float32)       # (Bb, L, D)

    # ---- fc1 + ReLU : accumulate over sequence positions (no flatten) ------
    # fc1_w packed as (L, D, H) in torch's channel-major flatten order, so we
    # never materialize a (B, L*D) flatten buffer.  Dropout = eval identity.
    hh = jnp.dot(h3[:, 0, :], fc1w_ref[0], preferred_element_type=jnp.float32)
    for l in range(1, L):                                     # static unroll
        hh += jnp.dot(h3[:, l, :], fc1w_ref[l],
                      preferred_element_type=jnp.float32)
    hh = jnp.maximum(hh + fc1_b, 0.0)                         # (Bb, H)

    # ---- fc2 (lane-dense output, zero-padded to 128 columns) ---------------
    o_ref[...] = jnp.dot(hh, fc2w_ref[...],
                         preferred_element_type=jnp.float32) + fc2_b


def tcnn_forward(x_ncl, params, block_b=None):
    """x_ncl: (B, num_features, L) — PyTorch NCL layout. Returns (B, 2)."""
    B, Cin, L = x_ncl.shape
    C1 = params["w1"].shape[2]
    C2 = params["w2"].shape[2]
    H = params["fc1_w"].shape[2]

    if block_b is None:
        # block_b * L rows per MXU pass: 8 * 16 = 128 (fills v5e's 128-row
        # MXU).  Raise to 16 on v6e/v7x (256-row MXU) when B allows.
        block_b = 8 if B % 8 == 0 else B
    assert B % block_b == 0
    grid = (B // block_b,)

    # Single tiny XLA prep: fused transpose + zero-pad of the raw input
    # (cheaper than an in-kernel transpose of a non-tile-aligned (Cin, L)
    # block; negligible at these sizes).
    x_pad = jnp.pad(jnp.transpose(x_ncl, (0, 2, 1)), ((0, 0), (1, 1), (0, 0)))

    w_map2 = lambda i: (0, 0)
    w_map3 = lambda i: (0, 0, 0)

    out = pl.pallas_call(
        _tcnn_fused_kernel,
        out_shape=jax.ShapeDtypeStruct((B, 128), jnp.float32),
        grid=grid,
        in_specs=[
            pl.BlockSpec((block_b, L + 2, Cin), lambda i: (i, 0, 0)),
            pl.BlockSpec((3, Cin, C1), w_map3),
            pl.BlockSpec((3, C1, C2), w_map3),
            pl.BlockSpec((C2, 3 * C2), w_map2),
            pl.BlockSpec((L, C2, H), w_map3),
            pl.BlockSpec((H, 128), w_map2),
            pl.BlockSpec((8, 128), w_map2),
        ],
        out_specs=pl.BlockSpec((block_b, 128), lambda i: (i, 0)),
        compiler_params=pltpu.CompilerParams(
            dimension_semantics=("parallel",)),
    )(x_pad, params["w1"], params["w2"], params["wqkv"],
      params["fc1_w"], params["fc2_w"], params["bias"])
    return out[:, :2]


# ----------------------------------------------------------------------------
# Host-side parameter packing (torch layout -> fused-kernel layout)
# ----------------------------------------------------------------------------
def pack_params(tp, eps=1e-5):
    C1, Cin, K = tp["conv1_w"].shape
    C2 = tp["conv2_w"].shape[0]
    H, F = tp["fc1_w"].shape
    L = F // C2
    assert C1 <= 128 and 3 * C2 <= 128 and H <= 128

    def fold(gamma, beta, mean, var, conv_b):
        s = gamma / jnp.sqrt(var + eps)
        # BN(conv+b) = conv_nobias * s + (beta + (b - mean) * s)
        return s, beta + (conv_b - mean) * s

    scale1, shift1 = fold(tp["bn1_g"], tp["bn1_b"], tp["bn1_m"], tp["bn1_v"],
                          tp["conv1_b"])
    scale2, shift2 = fold(tp["bn2_g"], tp["bn2_b"], tp["bn2_m"], tp["bn2_v"],
                          tp["conv2_b"])

    # Conv weights: (Cout, Cin, K) -> (K, Cin, Cout) with BN scale folded in.
    w1 = jnp.transpose(tp["conv1_w"], (2, 1, 0)) * scale1[None, None, :]
    w2 = jnp.transpose(tp["conv2_w"], (2, 1, 0)) * scale2[None, None, :]

    # Fused QKV weight (D, 3D); biases go into the shared slab below.
    wqkv = jnp.concatenate([tp["q_w"].T, tp["k_w"].T, tp["v_w"].T], axis=1)
    bqkv = jnp.concatenate([tp["q_b"], tp["k_b"], tp["v_b"]])

    # fc1 packed (L, C2, H): fc1w[l, c, h] = fc1_w_torch[h, c*L + l], so the
    # kernel consumes the channel-last attention output with torch's
    # channel-major flatten semantics and no flatten buffer.
    fc1_w = jnp.transpose(tp["fc1_w"].reshape(H, C2, L), (2, 1, 0))

    # fc2 zero-padded to 128 output columns -> lane-dense output store.
    fc2_w = jnp.zeros((H, 128), jnp.float32).at[:, :2].set(tp["fc2_w"].T)

    # Single (8, 128) slab of per-channel shifts / biases (one DMA).
    bias = jnp.zeros((8, 128), jnp.float32)
    bias = bias.at[0, :C1].set(shift1)
    bias = bias.at[1, :C2].set(shift2)
    bias = bias.at[2, :3 * C2].set(bqkv)
    bias = bias.at[3, :H].set(tp["fc1_b"])
    bias = bias.at[4, :2].set(tp["fc2_b"])

    return dict(w1=w1, w2=w2, wqkv=wqkv, fc1_w=fc1_w, fc2_w=fc2_w, bias=bias)


# ----------------------------------------------------------------------------
# Pure-JAX reference (torch-layout math) for correctness checking
# ----------------------------------------------------------------------------
def tcnn_reference(x_ncl, tp):
    def conv1d(x, w_oik, b):
        y = jax.lax.conv_general_dilated(
            x, w_oik, window_strides=(1,), padding=[(1, 1)],
            dimension_numbers=("NCH", "OIH", "NCH"))
        return y + b[None, :, None]

    def bn(x, gamma, beta, mean, var, eps=1e-5):
        s = gamma / jnp.sqrt(var + eps)
        return x * s[None, :, None] + (beta - mean * s)[None, :, None]

    x = jax.nn.relu(bn(conv1d(x_ncl, tp["conv1_w"], tp["conv1_b"]),
                       tp["bn1_g"], tp["bn1_b"], tp["bn1_m"], tp["bn1_v"]))
    x = jax.nn.relu(bn(conv1d(x, tp["conv2_w"], tp["conv2_b"]),
                       tp["bn2_g"], tp["bn2_b"], tp["bn2_m"], tp["bn2_v"]))

    xl = jnp.transpose(x, (0, 2, 1))                         # (B, L, D)
    q = xl @ tp["q_w"].T + tp["q_b"]
    k = xl @ tp["k_w"].T + tp["k_b"]
    v = xl @ tp["v_w"].T + tp["v_b"]
    s = jnp.einsum("bqd,bkd->bqk", q, k) / jnp.sqrt(jnp.float32(q.shape[-1]))
    a = jax.nn.softmax(s, axis=-1)
    xl = jnp.einsum("bqk,bkd->bqd", a, v)
    x = jnp.transpose(xl, (0, 2, 1))                         # (B, C, L)

    flat = x.reshape(x.shape[0], -1)
    h = jax.nn.relu(flat @ tp["fc1_w"].T + tp["fc1_b"])
    return h @ tp["fc2_w"].T + tp["fc2_b"]


# ----------------------------------------------------------------------------
if __name__ == "__main__":
    # Module hyper-parameters (consistent with the PyTorch ctor; seq_len=16).
    B, num_features, out_channels, kernel_size, seq_len = 16, 4, 8, 3, 16
    C1 = out_channels                                  # 8
    C2 = out_channels * 2                              # 16 (attention embed)
    F = C2 * (seq_len - 2 * (kernel_size - 3))         # 256
    H = out_channels * 4                               # 32

    key = jax.random.PRNGKey(0)
    ks = jax.random.split(key, 24)

    def rn(k, shape, scale=0.1):
        return (scale * jax.random.normal(k, shape)).astype(jnp.float32)

    # ---- deterministic "torch layout" parameters ----
    tp = dict(
        conv1_w=rn(ks[0], (C1, num_features, kernel_size)),
        conv1_b=rn(ks[1], (C1,)),
        bn1_g=1.0 + rn(ks[2], (C1,)),
        bn1_b=rn(ks[3], (C1,)),
        bn1_m=rn(ks[4], (C1,)),
        bn1_v=0.5 + jax.random.uniform(ks[5], (C1,), dtype=jnp.float32),
        conv2_w=rn(ks[6], (C2, C1, kernel_size)),
        conv2_b=rn(ks[7], (C2,)),
        bn2_g=1.0 + rn(ks[8], (C2,)),
        bn2_b=rn(ks[9], (C2,)),
        bn2_m=rn(ks[10], (C2,)),
        bn2_v=0.5 + jax.random.uniform(ks[11], (C2,), dtype=jnp.float32),
        q_w=rn(ks[12], (C2, C2)), q_b=rn(ks[13], (C2,)),
        k_w=rn(ks[14], (C2, C2)), k_b=rn(ks[15], (C2,)),
        v_w=rn(ks[16], (C2, C2)), v_b=rn(ks[17], (C2,)),
        fc1_w=rn(ks[18], (H, F)), fc1_b=rn(ks[19], (H,)),
        fc2_w=rn(ks[20], (2, H)), fc2_b=rn(ks[21], (2,)),
    )

    params = pack_params(tp)

    # ---- run ----
    x = jax.random.normal(ks[22], (B, num_features, seq_len), dtype=jnp.float32)

    logits = jax.jit(tcnn_forward)(x, params)
    logits = jax.block_until_ready(logits)

    ref = tcnn_reference(x, tp)
    assert logits.shape == (B, 2)
    # Tolerance covers XLA's default (bf16-pass) f32 matmul precision in the
    # reference path; the approximate-reciprocal softmax has been removed.
    err = jnp.max(jnp.abs(logits - ref))
    assert jnp.allclose(logits, ref, rtol=1e-2, atol=1e-2), (
        f"mismatch: max err {err}")

    print("KERNEL_OK")
</pallas_src>

<mosaic_0001>
module attributes {stable_mosaic.version = 11 : i64} {
  func.func @_tcnn_fused_kernel(%arg0: i32, %arg1: memref<8x18x4xf32, #tpu.memory_space<vmem>>, %arg2: memref<3x4x8xf32, #tpu.memory_space<vmem>>, %arg3: memref<3x8x16xf32, #tpu.memory_space<vmem>>, %arg4: memref<16x48xf32, #tpu.memory_space<vmem>>, %arg5: memref<16x16x32xf32, #tpu.memory_space<vmem>>, %arg6: memref<32x128xf32, #tpu.memory_space<vmem>>, %arg7: memref<8x128xf32, #tpu.memory_space<vmem>>, %arg8: memref<8x128xf32, #tpu.memory_space<vmem>>) attributes {dimension_semantics = [#tpu.dimension_semantics<parallel>], iteration_bounds = array<i64: 2>, scalar_prefetch = 0 : i64, scratch_operands = 0 : i64, tpu.core_type = #tpu.core_type<tc>, window_params = [{transform_indices = @transform_0, window_bounds = array<i64: 8, 18, 4>}, {pipeline_mode = #tpu.pipeline_mode<synchronous>, transform_indices = @transform_1, window_bounds = array<i64: 3, 4, 8>}, {pipeline_mode = #tpu.pipeline_mode<synchronous>, transform_indices = @transform_2, window_bounds = array<i64: 3, 8, 16>}, {pipeline_mode = #tpu.pipeline_mode<synchronous>, transform_indices = @transform_3, window_bounds = array<i64: 16, 48>}, {pipeline_mode = #tpu.pipeline_mode<synchronous>, transform_indices = @transform_4, window_bounds = array<i64: 16, 16, 32>}, {pipeline_mode = #tpu.pipeline_mode<synchronous>, transform_indices = @transform_5, window_bounds = array<i64: 32, 128>}, {pipeline_mode = #tpu.pipeline_mode<synchronous>, transform_indices = @transform_6, window_bounds = array<i64: 8, 128>}, {transform_indices = @transform_7, window_bounds = array<i64: 8, 128>}]} {
    %c0 = arith.constant 0 : index
    %c0_0 = arith.constant 0 : index
    %0 = vector.load %arg7[%c0, %c0_0] : memref<8x128xf32, #tpu.memory_space<vmem>>, vector<1x8xf32>
    %c1 = arith.constant 1 : index
    %c0_1 = arith.constant 0 : index
    %1 = vector.load %arg7[%c1, %c0_1] : memref<8x128xf32, #tpu.memory_space<vmem>>, vector<1x16xf32>
    %c2 = arith.constant 2 : index
    %c0_2 = arith.constant 0 : index
    %2 = vector.load %arg7[%c2, %c0_2] : memref<8x128xf32, #tpu.memory_space<vmem>>, vector<1x48xf32>
    %c3 = arith.constant 3 : index
    %c0_3 = arith.constant 0 : index
    %3 = vector.load %arg7[%c3, %c0_3] : memref<8x128xf32, #tpu.memory_space<vmem>>, vector<1x32xf32>
    %c4 = arith.constant 4 : index
    %c0_4 = arith.constant 0 : index
    %4 = vector.load %arg7[%c4, %c0_4] : memref<8x128xf32, #tpu.memory_space<vmem>>, vector<1x128xf32>
    %c0_5 = arith.constant 0 : index
    %c0_6 = arith.constant 0 : index
    %c0_7 = arith.constant 0 : index
    %5 = vector.load %arg1[%c0_5, %c0_6, %c0_7] : memref<8x18x4xf32, #tpu.memory_space<vmem>>, vector<8x18x4xf32>
    %6 = vector.extract_strided_slice %5 {offsets = [0, 0, 0], sizes = [8, 16, 4], strides = [1, 1, 1]} : vector<8x18x4xf32> to vector<8x16x4xf32>
    %7 = vector.shape_cast %6 : vector<8x16x4xf32> to vector<128x4xf32>
    %c0_8 = arith.constant 0 : index
    %c0_9 = arith.constant 0 : index
    %c0_10 = arith.constant 0 : index
    %8 = vector.load %arg2[%c0_8, %c0_9, %c0_10] : memref<3x4x8xf32, #tpu.memory_space<vmem>>, vector<1x4x8xf32>
    %9 = vector.shape_cast %8 : vector<1x4x8xf32> to vector<4x8xf32>
    %cst = arith.constant dense<0.000000e+00> : vector<128x8xf32>
    %10 = tpu.matmul %7, %9, %cst {dimension_numbers = #tpu.dot_dimension_numbers<[1], [0], [0], [1], [0, 0, 1, 1], [], []>} : vector<128x4xf32>, vector<4x8xf32>, vector<128x8xf32> -> vector<128x8xf32>
    %11 = vector.extract_strided_slice %5 {offsets = [0, 1, 0], sizes = [8, 16, 4], strides = [1, 1, 1]} : vector<8x18x4xf32> to vector<8x16x4xf32>
    %12 = vector.shape_cast %11 : vector<8x16x4xf32> to vector<128x4xf32>
    %c1_11 = arith.constant 1 : index
    %c0_12 = arith.constant 0 : index
    %c0_13 = arith.constant 0 : index
    %13 = vector.load %arg2[%c1_11, %c0_12, %c0_13] : memref<3x4x8xf32, #tpu.memory_space<vmem>>, vector<1x4x8xf32>
    %14 = vector.shape_cast %13 : vector<1x4x8xf32> to vector<4x8xf32>
    %cst_14 = arith.constant dense<0.000000e+00> : vector<128x8xf32>
    %15 = tpu.matmul %12, %14, %cst_14 {dimension_numbers = #tpu.dot_dimension_numbers<[1], [0], [0], [1], [0, 0, 1, 1], [], []>} : vector<128x4xf32>, vector<4x8xf32>, vector<128x8xf32> -> vector<128x8xf32>
    %16 = arith.addf %10, %15 : vector<128x8xf32>
    %17 = vector.extract_strided_slice %5 {offsets = [0, 2, 0], sizes = [8, 16, 4], strides = [1, 1, 1]} : vector<8x18x4xf32> to vector<8x16x4xf32>
    %18 = vector.shape_cast %17 : vector<8x16x4xf32> to vector<128x4xf32>
    %c2_15 = arith.constant 2 : index
    %c0_16 = arith.constant 0 : index
    %c0_17 = arith.constant 0 : index
    %19 = vector.load %arg2[%c2_15, %c0_16, %c0_17] : memref<3x4x8xf32, #tpu.memory_space<vmem>>, vector<1x4x8xf32>
    %20 = vector.shape_cast %19 : vector<1x4x8xf32> to vector<4x8xf32>
    %cst_18 = arith.constant dense<0.000000e+00> : vector<128x8xf32>
    %21 = tpu.matmul %18, %20, %cst_18 {dimension_numbers = #tpu.dot_dimension_numbers<[1], [0], [0], [1], [0, 0, 1, 1], [], []>} : vector<128x4xf32>, vector<4x8xf32>, vector<128x8xf32> -> vector<128x8xf32>
    %22 = arith.addf %16, %21 : vector<128x8xf32>
    %23 = vector.broadcast %0 : vector<1x8xf32> to vector<128x8xf32>
    %24 = arith.addf %22, %23 : vector<128x8xf32>
    %cst_19 = arith.constant 0.000000e+00 : f32
    %25 = vector.broadcast %cst_19 : f32 to vector<128x8xf32>
    %26 = arith.maximumf %24, %25 : vector<128x8xf32>
    %27 = vector.shape_cast %26 : vector<128x8xf32> to vector<8x16x8xf32>
    %cst_20 = arith.constant 0.000000e+00 : f32
    %28 = vector.broadcast %cst_20 : f32 to vector<8x1x8xf32>
    %29 = vector.extract_strided_slice %27 {offsets = [0, 0, 0], sizes = [8, 15, 8], strides = [1, 1, 1]} : vector<8x16x8xf32> to vector<8x15x8xf32>
    %30 = tpu.concatenate %28, %29 in 1 : vector<8x1x8xf32>, vector<8x15x8xf32> -> vector<8x16x8xf32>
    %31 = vector.shape_cast %30 : vector<8x16x8xf32> to vector<128x8xf32>
    %32 = vector.extract_strided_slice %27 {offsets = [0, 1, 0], sizes = [8, 15, 8], strides = [1, 1, 1]} : vector<8x16x8xf32> to vector<8x15x8xf32>
    %33 = tpu.concatenate %32, %28 in 1 : vector<8x15x8xf32>, vector<8x1x8xf32> -> vector<8x16x8xf32>
    %34 = vector.shape_cast %33 : vector<8x16x8xf32> to vector<128x8xf32>
    %c0_21 = arith.constant 0 : index
    %c0_22 = arith.constant 0 : index
    %c0_23 = arith.constant 0 : index
    %35 = vector.load %arg3[%c0_21, %c0_22, %c0_23] : memref<3x8x16xf32, #tpu.memory_space<vmem>>, vector<1x8x16xf32>
    %36 = vector.shape_cast %35 : vector<1x8x16xf32> to vector<8x16xf32>
    %cst_24 = arith.constant dense<0.000000e+00> : vector<128x16xf32>
    %37 = tpu.matmul %31, %36, %cst_24 {dimension_numbers = #tpu.dot_dimension_numbers<[1], [0], [0], [1], [0, 0, 1, 1], [], []>} : vector<128x8xf32>, vector<8x16xf32>, vector<128x16xf32> -> vector<128x16xf32>
    %c1_25 = arith.constant 1 : index
    %c0_26 = arith.constant 0 : index
    %c0_27 = arith.constant 0 : index
    %38 = vector.load %arg3[%c1_25, %c0_26, %c0_27] : memref<3x8x16xf32, #tpu.memory_space<vmem>>, vector<1x8x16xf32>
    %39 = vector.shape_cast %38 : vector<1x8x16xf32> to vector<8x16xf32>
    %cst_28 = arith.constant dense<0.000000e+00> : vector<128x16xf32>
    %40 = tpu.matmul %26, %39, %cst_28 {dimension_numbers = #tpu.dot_dimension_numbers<[1], [0], [0], [1], [0, 0, 1, 1], [], []>} : vector<128x8xf32>, vector<8x16xf32>, vector<128x16xf32> -> vector<128x16xf32>
    %41 = arith.addf %37, %40 : vector<128x16xf32>
    %c2_29 = arith.constant 2 : index
    %c0_30 = arith.constant 0 : index
    %c0_31 = arith.constant 0 : index
    %42 = vector.load %arg3[%c2_29, %c0_30, %c0_31] : memref<3x8x16xf32, #tpu.memory_space<vmem>>, vector<1x8x16xf32>
    %43 = vector.shape_cast %42 : vector<1x8x16xf32> to vector<8x16xf32>
    %cst_32 = arith.constant dense<0.000000e+00> : vector<128x16xf32>
    %44 = tpu.matmul %34, %43, %cst_32 {dimension_numbers = #tpu.dot_dimension_numbers<[1], [0], [0], [1], [0, 0, 1, 1], [], []>} : vector<128x8xf32>, vector<8x16xf32>, vector<128x16xf32> -> vector<128x16xf32>
    %45 = arith.addf %41, %44 : vector<128x16xf32>
    %46 = vector.broadcast %1 : vector<1x16xf32> to vector<128x16xf32>
    %47 = arith.addf %45, %46 : vector<128x16xf32>
    %cst_33 = arith.constant 0.000000e+00 : f32
    %48 = vector.broadcast %cst_33 : f32 to vector<128x16xf32>
    %49 = arith.maximumf %47, %48 : vector<128x16xf32>
    %c0_34 = arith.constant 0 : index
    %c0_35 = arith.constant 0 : index
    %50 = vector.load %arg4[%c0_34, %c0_35] : memref<16x48xf32, #tpu.memory_space<vmem>>, vector<16x48xf32>
    %cst_36 = arith.constant dense<0.000000e+00> : vector<128x48xf32>
    %51 = tpu.matmul %49, %50, %cst_36 {dimension_numbers = #tpu.dot_dimension_numbers<[1], [0], [0], [1], [0, 0, 1, 1], [], []>} : vector<128x16xf32>, vector<16x48xf32>, vector<128x48xf32> -> vector<128x48xf32>
    %52 = vector.broadcast %2 : vector<1x48xf32> to vector<128x48xf32>
    %53 = arith.addf %51, %52 : vector<128x48xf32>
    %54 = vector.extract_strided_slice %53 {offsets = [0, 0], sizes = [128, 16], strides = [1, 1]} : vector<128x48xf32> to vector<128x16xf32>
    %55 = vector.shape_cast %54 : vector<128x16xf32> to vector<8x16x16xf32>
    %56 = vector.extract_strided_slice %53 {offsets = [0, 16], sizes = [128, 16], strides = [1, 1]} : vector<128x48xf32> to vector<128x16xf32>
    %57 = vector.shape_cast %56 : vector<128x16xf32> to vector<8x16x16xf32>
    %58 = vector.extract_strided_slice %53 {offsets = [0, 32], sizes = [128, 16], strides = [1, 1]} : vector<128x48xf32> to vector<128x16xf32>
    %59 = vector.shape_cast %58 : vector<128x16xf32> to vector<8x16x16xf32>
    "tpu.trace_start"() <{level = 10 : i32, message = "bqd,bkd->bqk"}> : () -> ()
    %cst_37 = arith.constant dense<0.000000e+00> : vector<8x16x16xf32>
    %60 = tpu.matmul %55, %57, %cst_37 {dimension_numbers = #tpu.dot_dimension_numbers<[2], [2], [1], [1], [0, 0, 0, 1, 1, 1], [0], [0]>} : vector<8x16x16xf32>, vector<8x16x16xf32>, vector<8x16x16xf32> -> vector<8x16x16xf32>
    "tpu.trace_stop"() : () -> ()
    %cst_38 = arith.constant 2.500000e-01 : f32
    %61 = vector.broadcast %cst_38 : f32 to vector<8x16x16xf32>
    %62 = arith.mulf %60, %61 : vector<8x16x16xf32>
    %cst_39 = arith.constant dense<0xFF800000> : vector<8x16xf32>
    %63 = vector.multi_reduction <maximumf>, %62, %cst_39 [2] : vector<8x16x16xf32> to vector<8x16xf32>
    %64 = vector.shape_cast %63 : vector<8x16xf32> to vector<8x16x1xf32>
    %65 = vector.broadcast %64 : vector<8x16x1xf32> to vector<8x16x16xf32>
    %66 = arith.subf %62, %65 : vector<8x16x16xf32>
    %67 = math.exp %66 : vector<8x16x16xf32>
    %cst_40 = arith.constant dense<0.000000e+00> : vector<8x16xf32>
    %68 = vector.multi_reduction <add>, %67, %cst_40 [2] : vector<8x16x16xf32> to vector<8x16xf32>
    %69 = vector.shape_cast %68 : vector<8x16xf32> to vector<8x16x1xf32>
    %70 = vector.broadcast %69 : vector<8x16x1xf32> to vector<8x16x16xf32>
    %71 = arith.divf %67, %70 : vector<8x16x16xf32>
    "tpu.trace_start"() <{level = 10 : i32, message = "bqk,bkd->bqd"}> : () -> ()
    %cst_41 = arith.constant dense<0.000000e+00> : vector<8x16x16xf32>
    %72 = tpu.matmul %71, %59, %cst_41 {dimension_numbers = #tpu.dot_dimension_numbers<[2], [1], [1], [2], [0, 0, 0, 1, 1, 2], [0], [0]>} : vector<8x16x16xf32>, vector<8x16x16xf32>, vector<8x16x16xf32> -> vector<8x16x16xf32>
    "tpu.trace_stop"() : () -> ()
    %73 = vector.extract_strided_slice %72 {offsets = [0, 0, 0], sizes = [8, 1, 16], strides = [1, 1, 1]} : vector<8x16x16xf32> to vector<8x1x16xf32>
    %74 = vector.shape_cast %73 : vector<8x1x16xf32> to vector<8x16xf32>
    %c0_42 = arith.constant 0 : index
    %c0_43 = arith.constant 0 : index
    %c0_44 = arith.constant 0 : index
    %75 = vector.load %arg5[%c0_42, %c0_43, %c0_44] : memref<16x16x32xf32, #tpu.memory_space<vmem>>, vector<1x16x32xf32>
    %76 = vector.shape_cast %75 : vector<1x16x32xf32> to vector<16x32xf32>
    %cst_45 = arith.constant dense<0.000000e+00> : vector<8x32xf32>
    %77 = tpu.matmul %74, %76, %cst_45 {dimension_numbers = #tpu.dot_dimension_numbers<[1], [0], [0], [1], [0, 0, 1, 1], [], []>} : vector<8x16xf32>, vector<16x32xf32>, vector<8x32xf32> -> vector<8x32xf32>
    %78 = vector.extract_strided_slice %72 {offsets = [0, 1, 0], sizes = [8, 1, 16], strides = [1, 1, 1]} : vector<8x16x16xf32> to vector<8x1x16xf32>
    %79 = vector.shape_cast %78 : vector<8x1x16xf32> to vector<8x16xf32>
    %c1_46 = arith.constant 1 : index
    %c0_47 = arith.constant 0 : index
    %c0_48 = arith.constant 0 : index
    %80 = vector.load %arg5[%c1_46, %c0_47, %c0_48] : memref<16x16x32xf32, #tpu.memory_space<vmem>>, vector<1x16x32xf32>
    %81 = vector.shape_cast %80 : vector<1x16x32xf32> to vector<16x32xf32>
    %cst_49 = arith.constant dense<0.000000e+00> : vector<8x32xf32>
    %82 = tpu.matmul %79, %81, %cst_49 {dimension_numbers = #tpu.dot_dimension_numbers<[1], [0], [0], [1], [0, 0, 1, 1], [], []>} : vector<8x16xf32>, vector<16x32xf32>, vector<8x32xf32> -> vector<8x32xf32>
    %83 = arith.addf %77, %82 : vector<8x32xf32>
    %84 = vector.extract_strided_slice %72 {offsets = [0, 2, 0], sizes = [8, 1, 16], strides = [1, 1, 1]} : vector<8x16x16xf32> to vector<8x1x16xf32>
    %85 = vector.shape_cast %84 : vector<8x1x16xf32> to vector<8x16xf32>
    %c2_50 = arith.constant 2 : index
    %c0_51 = arith.constant 0 : index
    %c0_52 = arith.constant 0 : index
    %86 = vector.load %arg5[%c2_50, %c0_51, %c0_52] : memref<16x16x32xf32, #tpu.memory_space<vmem>>, vector<1x16x32xf32>
    %87 = vector.shape_cast %86 : vector<1x16x32xf32> to vector<16x32xf32>
    %cst_53 = arith.constant dense<0.000000e+00> : vector<8x32xf32>
    %88 = tpu.matmul %85, %87, %cst_53 {dimension_numbers = #tpu.dot_dimension_numbers<[1], [0], [0], [1], [0, 0, 1, 1], [], []>} : vector<8x16xf32>, vector<16x32xf32>, vector<8x32xf32> -> vector<8x32xf32>
    %89 = arith.addf %83, %88 : vector<8x32xf32>
    %90 = vector.extract_strided_slice %72 {offsets = [0, 3, 0], sizes = [8, 1, 16], strides = [1, 1, 1]} : vector<8x16x16xf32> to vector<8x1x16xf32>
    %91 = vector.shape_cast %90 : vector<8x1x16xf32> to vector<8x16xf32>
    %c3_54 = arith.constant 3 : index
    %c0_55 = arith.constant 0 : index
    %c0_56 = arith.constant 0 : index
    %92 = vector.load %arg5[%c3_54, %c0_55, %c0_56] : memref<16x16x32xf32, #tpu.memory_space<vmem>>, vector<1x16x32xf32>
    %93 = vector.shape_cast %92 : vector<1x16x32xf32> to vector<16x32xf32>
    %cst_57 = arith.constant dense<0.000000e+00> : vector<8x32xf32>
    %94 = tpu.matmul %91, %93, %cst_57 {dimension_numbers = #tpu.dot_dimension_numbers<[1], [0], [0], [1], [0, 0, 1, 1], [], []>} : vector<8x16xf32>, vector<16x32xf32>, vector<8x32xf32> -> vector<8x32xf32>
    %95 = arith.addf %89, %94 : vector<8x32xf32>
    %96 = vector.extract_strided_slice %72 {offsets = [0, 4, 0], sizes = [8, 1, 16], strides = [1, 1, 1]} : vector<8x16x16xf32> to vector<8x1x16xf32>
    %97 = vector.shape_cast %96 : vector<8x1x16xf32> to vector<8x16xf32>
    %c4_58 = arith.constant 4 : index
    %c0_59 = arith.constant 0 : index
    %c0_60 = arith.constant 0 : index
    %98 = vector.load %arg5[%c4_58, %c0_59, %c0_60] : memref<16x16x32xf32, #tpu.memory_space<vmem>>, vector<1x16x32xf32>
    %99 = vector.shape_cast %98 : vector<1x16x32xf32> to vector<16x32xf32>
    %cst_61 = arith.constant dense<0.000000e+00> : vector<8x32xf32>
    %100 = tpu.matmul %97, %99, %cst_61 {dimension_numbers = #tpu.dot_dimension_numbers<[1], [0], [0], [1], [0, 0, 1, 1], [], []>} : vector<8x16xf32>, vector<16x32xf32>, vector<8x32xf32> -> vector<8x32xf32>
    %101 = arith.addf %95, %100 : vector<8x32xf32>
    %102 = vector.extract_strided_slice %72 {offsets = [0, 5, 0], sizes = [8, 1, 16], strides = [1, 1, 1]} : vector<8x16x16xf32> to vector<8x1x16xf32>
    %103 = vector.shape_cast %102 : vector<8x1x16xf32> to vector<8x16xf32>
    %c5 = arith.constant 5 : index
    %c0_62 = arith.constant 0 : index
    %c0_63 = arith.constant 0 : index
    %104 = vector.load %arg5[%c5, %c0_62, %c0_63] : memref<16x16x32xf32, #tpu.memory_space<vmem>>, vector<1x16x32xf32>
    %105 = vector.shape_cast %104 : vector<1x16x32xf32> to vector<16x32xf32>
    %cst_64 = arith.constant dense<0.000000e+00> : vector<8x32xf32>
    %106 = tpu.matmul %103, %105, %cst_64 {dimension_numbers = #tpu.dot_dimension_numbers<[1], [0], [0], [1], [0, 0, 1, 1], [], []>} : vector<8x16xf32>, vector<16x32xf32>, vector<8x32xf32> -> vector<8x32xf32>
    %107 = arith.addf %101, %106 : vector<8x32xf32>
    %108 = vector.extract_strided_slice %72 {offsets = [0, 6, 0], sizes = [8, 1, 16], strides = [1, 1, 1]} : vector<8x16x16xf32> to vector<8x1x16xf32>
    %109 = vector.shape_cast %108 : vector<8x1x16xf32> to vector<8x16xf32>
    %c6 = arith.constant 6 : index
    %c0_65 = arith.constant 0 : index
    %c0_66 = arith.constant 0 : index
    %110 = vector.load %arg5[%c6, %c0_65, %c0_66] : memref<16x16x32xf32, #tpu.memory_space<vmem>>, vector<1x16x32xf32>
    %111 = vector.shape_cast %110 : vector<1x16x32xf32> to vector<16x32xf32>
    %cst_67 = arith.constant dense<0.000000e+00> : vector<8x32xf32>
    %112 = tpu.matmul %109, %111, %cst_67 {dimension_numbers = #tpu.dot_dimension_numbers<[1], [0], [0], [1], [0, 0, 1, 1], [], []>} : vector<8x16xf32>, vector<16x32xf32>, vector<8x32xf32> -> vector<8x32xf32>
    %113 = arith.addf %107, %112 : vector<8x32xf32>
    %114 = vector.extract_strided_slice %72 {offsets = [0, 7, 0], sizes = [8, 1, 16], strides = [1, 1, 1]} : vector<8x16x16xf32> to vector<8x1x16xf32>
    %115 = vector.shape_cast %114 : vector<8x1x16xf32> to vector<8x16xf32>
    %c7 = arith.constant 7 : index
    %c0_68 = arith.constant 0 : index
    %c0_69 = arith.constant 0 : index
    %116 = vector.load %arg5[%c7, %c0_68, %c0_69] : memref<16x16x32xf32, #tpu.memory_space<vmem>>, vector<1x16x32xf32>
    %117 = vector.shape_cast %116 : vector<1x16x32xf32> to vector<16x32xf32>
    %cst_70 = arith.constant dense<0.000000e+00> : vector<8x32xf32>
    %118 = tpu.matmul %115, %117, %cst_70 {dimension_numbers = #tpu.dot_dimension_numbers<[1], [0], [0], [1], [0, 0, 1, 1], [], []>} : vector<8x16xf32>, vector<16x32xf32>, vector<8x32xf32> -> vector<8x32xf32>
    %119 = arith.addf %113, %118 : vector<8x32xf32>
    %120 = vector.extract_strided_slice %72 {offsets = [0, 8, 0], sizes = [8, 1, 16], strides = [1, 1, 1]} : vector<8x16x16xf32> to vector<8x1x16xf32>
    %121 = vector.shape_cast %120 : vector<8x1x16xf32> to vector<8x16xf32>
    %c8 = arith.constant 8 : index
    %c0_71 = arith.constant 0 : index
    %c0_72 = arith.constant 0 : index
    %122 = vector.load %arg5[%c8, %c0_71, %c0_72] : memref<16x16x32xf32, #tpu.memory_space<vmem>>, vector<1x16x32xf32>
    %123 = vector.shape_cast %122 : vector<1x16x32xf32> to vector<16x32xf32>
    %cst_73 = arith.constant dense<0.000000e+00> : vector<8x32xf32>
    %124 = tpu.matmul %121, %123, %cst_73 {dimension_numbers = #tpu.dot_dimension_numbers<[1], [0], [0], [1], [0, 0, 1, 1], [], []>} : vector<8x16xf32>, vector<16x32xf32>, vector<8x32xf32> -> vector<8x32xf32>
    %125 = arith.addf %119, %124 : vector<8x32xf32>
    %126 = vector.extract_strided_slice %72 {offsets = [0, 9, 0], sizes = [8, 1, 16], strides = [1, 1, 1]} : vector<8x16x16xf32> to vector<8x1x16xf32>
    %127 = vector.shape_cast %126 : vector<8x1x16xf32> to vector<8x16xf32>
    %c9 = arith.constant 9 : index
    %c0_74 = arith.constant 0 : index
    %c0_75 = arith.constant 0 : index
    %128 = vector.load %arg5[%c9, %c0_74, %c0_75] : memref<16x16x32xf32, #tpu.memory_space<vmem>>, vector<1x16x32xf32>
    %129 = vector.shape_cast %128 : vector<1x16x32xf32> to vector<16x32xf32>
    %cst_76 = arith.constant dense<0.000000e+00> : vector<8x32xf32>
    %130 = tpu.matmul %127, %129, %cst_76 {dimension_numbers = #tpu.dot_dimension_numbers<[1], [0], [0], [1], [0, 0, 1, 1], [], []>} : vector<8x16xf32>, vector<16x32xf32>, vector<8x32xf32> -> vector<8x32xf32>
    %131 = arith.addf %125, %130 : vector<8x32xf32>
    %132 = vector.extract_strided_slice %72 {offsets = [0, 10, 0], sizes = [8, 1, 16], strides = [1, 1, 1]} : vector<8x16x16xf32> to vector<8x1x16xf32>
    %133 = vector.shape_cast %132 : vector<8x1x16xf32> to vector<8x16xf32>
    %c10 = arith.constant 10 : index
    %c0_77 = arith.constant 0 : index
    %c0_78 = arith.constant 0 : index
    %134 = vector.load %arg5[%c10, %c0_77, %c0_78] : memref<16x16x32xf32, #tpu.memory_space<vmem>>, vector<1x16x32xf32>
    %135 = vector.shape_cast %134 : vector<1x16x32xf32> to vector<16x32xf32>
    %cst_79 = arith.constant dense<0.000000e+00> : vector<8x32xf32>
    %136 = tpu.matmul %133, %135, %cst_79 {dimension_numbers = #tpu.dot_dimension_numbers<[1], [0], [0], [1], [0, 0, 1, 1], [], []>} : vector<8x16xf32>, vector<16x32xf32>, vector<8x32xf32> -> vector<8x32xf32>
    %137 = arith.addf %131, %136 : vector<8x32xf32>
    %138 = vector.extract_strided_slice %72 {offsets = [0, 11, 0], sizes = [8, 1, 16], strides = [1, 1, 1]} : vector<8x16x16xf32> to vector<8x1x16xf32>
    %139 = vector.shape_cast %138 : vector<8x1x16xf32> to vector<8x16xf32>
    %c11 = arith.constant 11 : index
    %c0_80 = arith.constant 0 : index
    %c0_81 = arith.constant 0 : index
    %140 = vector.load %arg5[%c11, %c0_80, %c0_81] : memref<16x16x32xf32, #tpu.memory_space<vmem>>, vector<1x16x32xf32>
    %141 = vector.shape_cast %140 : vector<1x16x32xf32> to vector<16x32xf32>
    %cst_82 = arith.constant dense<0.000000e+00> : vector<8x32xf32>
    %142 = tpu.matmul %139, %141, %cst_82 {dimension_numbers = #tpu.dot_dimension_numbers<[1], [0], [0], [1], [0, 0, 1, 1], [], []>} : vector<8x16xf32>, vector<16x32xf32>, vector<8x32xf32> -> vector<8x32xf32>
    %143 = arith.addf %137, %142 : vector<8x32xf32>
    %144 = vector.extract_strided_slice %72 {offsets = [0, 12, 0], sizes = [8, 1, 16], strides = [1, 1, 1]} : vector<8x16x16xf32> to vector<8x1x16xf32>
    %145 = vector.shape_cast %144 : vector<8x1x16xf32> to vector<8x16xf32>
    %c12 = arith.constant 12 : index
    %c0_83 = arith.constant 0 : index
    %c0_84 = arith.constant 0 : index
    %146 = vector.load %arg5[%c12, %c0_83, %c0_84] : memref<16x16x32xf32, #tpu.memory_space<vmem>>, vector<1x16x32xf32>
    %147 = vector.shape_cast %146 : vector<1x16x32xf32> to vector<16x32xf32>
    %cst_85 = arith.constant dense<0.000000e+00> : vector<8x32xf32>
    %148 = tpu.matmul %145, %147, %cst_85 {dimension_numbers = #tpu.dot_dimension_numbers<[1], [0], [0], [1], [0, 0, 1, 1], [], []>} : vector<8x16xf32>, vector<16x32xf32>, vector<8x32xf32> -> vector<8x32xf32>
    %149 = arith.addf %143, %148 : vector<8x32xf32>
    %150 = vector.extract_strided_slice %72 {offsets = [0, 13, 0], sizes = [8, 1, 16], strides = [1, 1, 1]} : vector<8x16x16xf32> to vector<8x1x16xf32>
    %151 = vector.shape_cast %150 : vector<8x1x16xf32> to vector<8x16xf32>
    %c13 = arith.constant 13 : index
    %c0_86 = arith.constant 0 : index
    %c0_87 = arith.constant 0 : index
    %152 = vector.load %arg5[%c13, %c0_86, %c0_87] : memref<16x16x32xf32, #tpu.memory_space<vmem>>, vector<1x16x32xf32>
    %153 = vector.shape_cast %152 : vector<1x16x32xf32> to vector<16x32xf32>
    %cst_88 = arith.constant dense<0.000000e+00> : vector<8x32xf32>
    %154 = tpu.matmul %151, %153, %cst_88 {dimension_numbers = #tpu.dot_dimension_numbers<[1], [0], [0], [1], [0, 0, 1, 1], [], []>} : vector<8x16xf32>, vector<16x32xf32>, vector<8x32xf32> -> vector<8x32xf32>
    %155 = arith.addf %149, %154 : vector<8x32xf32>
    %156 = vector.extract_strided_slice %72 {offsets = [0, 14, 0], sizes = [8, 1, 16], strides = [1, 1, 1]} : vector<8x16x16xf32> to vector<8x1x16xf32>
    %157 = vector.shape_cast %156 : vector<8x1x16xf32> to vector<8x16xf32>
    %c14 = arith.constant 14 : index
    %c0_89 = arith.constant 0 : index
    %c0_90 = arith.constant 0 : index
    %158 = vector.load %arg5[%c14, %c0_89, %c0_90] : memref<16x16x32xf32, #tpu.memory_space<vmem>>, vector<1x16x32xf32>
    %159 = vector.shape_cast %158 : vector<1x16x32xf32> to vector<16x32xf32>
    %cst_91 = arith.constant dense<0.000000e+00> : vector<8x32xf32>
    %160 = tpu.matmul %157, %159, %cst_91 {dimension_numbers = #tpu.dot_dimension_numbers<[1], [0], [0], [1], [0, 0, 1, 1], [], []>} : vector<8x16xf32>, vector<16x32xf32>, vector<8x32xf32> -> vector<8x32xf32>
    %161 = arith.addf %155, %160 : vector<8x32xf32>
    %162 = vector.extract_strided_slice %72 {offsets = [0, 15, 0], sizes = [8, 1, 16], strides = [1, 1, 1]} : vector<8x16x16xf32> to vector<8x1x16xf32>
    %163 = vector.shape_cast %162 : vector<8x1x16xf32> to vector<8x16xf32>
    %c15 = arith.constant 15 : index
    %c0_92 = arith.constant 0 : index
    %c0_93 = arith.constant 0 : index
    %164 = vector.load %arg5[%c15, %c0_92, %c0_93] : memref<16x16x32xf32, #tpu.memory_space<vmem>>, vector<1x16x32xf32>
    %165 = vector.shape_cast %164 : vector<1x16x32xf32> to vector<16x32xf32>
    %cst_94 = arith.constant dense<0.000000e+00> : vector<8x32xf32>
    %166 = tpu.matmul %163, %165, %cst_94 {dimension_numbers = #tpu.dot_dimension_numbers<[1], [0], [0], [1], [0, 0, 1, 1], [], []>} : vector<8x16xf32>, vector<16x32xf32>, vector<8x32xf32> -> vector<8x32xf32>
    %167 = arith.addf %161, %166 : vector<8x32xf32>
    %168 = vector.broadcast %3 : vector<1x32xf32> to vector<8x32xf32>
    %169 = arith.addf %167, %168 : vector<8x32xf32>
    %cst_95 = arith.constant 0.000000e+00 : f32
    %170 = vector.broadcast %cst_95 : f32 to vector<8x32xf32>
    %171 = arith.maximumf %169, %170 : vector<8x32xf32>
    %c0_96 = arith.constant 0 : index
    %c0_97 = arith.constant 0 : index
    %172 = vector.load %arg6[%c0_96, %c0_97] : memref<32x128xf32, #tpu.memory_space<vmem>>, vector<32x128xf32>
    %cst_98 = arith.constant dense<0.000000e+00> : vector<8x128xf32>
    %173 = tpu.matmul %171, %172, %cst_98 {dimension_numbers = #tpu.dot_dimension_numbers<[1], [0], [0], [1], [0, 0, 1, 1], [], []>} : vector<8x32xf32>, vector<32x128xf32>, vector<8x128xf32> -> vector<8x128xf32>
    %174 = vector.broadcast %4 : vector<1x128xf32> to vector<8x128xf32>
    %175 = arith.addf %173, %174 : vector<8x128xf32>
    %c0_99 = arith.constant 0 : index
    %c0_100 = arith.constant 0 : index
    %176 = vector.load %arg8[%c0_99, %c0_100] : memref<8x128xf32, #tpu.memory_space<vmem>>, vector<8x128xf32>
    tpu.vector_store %arg8[%c0_99, %c0_100], %175 {strides = array<i32>} : memref<8x128xf32, #tpu.memory_space<vmem>>, vector<8x128xf32>,
    return
  }
  func.func @transform_0(%arg0: i32) -> (i32, i32, i32) {
    %c0_i32 = arith.constant 0 : i32
    %c0_i32_0 = arith.constant 0 : i32
    %c0_i32_1 = arith.constant 0 : i32
    return %arg0, %c0_i32, %c0_i32_0 : i32, i32, i32
  }
  func.func @transform_1(%arg0: i32) -> (i32, i32, i32) {
    %c0_i32 = arith.constant 0 : i32
    %c0_i32_0 = arith.constant 0 : i32
    %c0_i32_1 = arith.constant 0 : i32
    %c0_i32_2 = arith.constant 0 : i32
    return %c0_i32, %c0_i32_0, %c0_i32_1 : i32, i32, i32
  }
  func.func @transform_2(%arg0: i32) -> (i32, i32, i32) {
    %c0_i32 = arith.constant 0 : i32
    %c0_i32_0 = arith.constant 0 : i32
    %c0_i32_1 = arith.constant 0 : i32
    %c0_i32_2 = arith.constant 0 : i32
    return %c0_i32, %c0_i32_0, %c0_i32_1 : i32, i32, i32
  }
  func.func @transform_3(%arg0: i32) -> (i32, i32) {
    %c0_i32 = arith.constant 0 : i32
    %c0_i32_0 = arith.constant 0 : i32
    %c0_i32_1 = arith.constant 0 : i32
    return %c0_i32, %c0_i32_0 : i32, i32
  }
  func.func @transform_4(%arg0: i32) -> (i32, i32, i32) {
    %c0_i32 = arith.constant 0 : i32
    %c0_i32_0 = arith.constant 0 : i32
    %c0_i32_1 = arith.constant 0 : i32
    %c0_i32_2 = arith.constant 0 : i32
    return %c0_i32, %c0_i32_0, %c0_i32_1 : i32, i32, i32
  }
  func.func @transform_5(%arg0: i32) -> (i32, i32) {
    %c0_i32 = arith.constant 0 : i32
    %c0_i32_0 = arith.constant 0 : i32
    %c0_i32_1 = arith.constant 0 : i32
    return %c0_i32, %c0_i32_0 : i32, i32
  }
  func.func @transform_6(%arg0: i32) -> (i32, i32) {
    %c0_i32 = arith.constant 0 : i32
    %c0_i32_0 = arith.constant 0 : i32
    %c0_i32_1 = arith.constant 0 : i32
    return %c0_i32, %c0_i32_0 : i32, i32
  }
  func.func @transform_7(%arg0: i32) -> (i32, i32) {
    %c0_i32 = arith.constant 0 : i32
    %c0_i32_0 = arith.constant 0 : i32
    return %arg0, %c0_i32 : i32, i32
  }
}

</mosaic_0001>

<bundles_post_ra>
// kernel: tcnn_forward.1
= control target key start
LH: loop header
LB: loop body
LE: loop exit
PB: predicated region body
PF: predicated region fallthrough
CT: control target
= control target key end

     0   :  { %s3465_s24 = smov 0   ;;  %s4601_s0 = inlined_call_operand.vmem [shape: f32[16,18,4], index: 0, kind: input, shape index: {}]   ;;  %s4602_s1 = inlined_call_operand.vmem [shape: f32[3,4,8], index: 1, kind: input, shape index: {}]   ;;  %s4603_s2 = inlined_call_operand.vmem [shape: f32[3,8,16], index: 2, kind: input, shape index: {}]   ;;  %s4604_s3 = inlined_call_operand.vmem [shape: f32[16,48], index: 3, kind: input, shape index: {}]   ;;  %s4605_s4 = inlined_call_operand.vmem [shape: f32[16,16,32], index: 4, kind: input, shape index: {}]   ;;  %s4606_s5 = inlined_call_operand.vmem [shape: f32[32,128], index: 5, kind: input, shape index: {}]   ;;  %s4607_s6 = inlined_call_operand.vmem [shape: f32[8,128], index: 6, kind: input, shape index: {}]   ;;  %s4608_s7 = inlined_call_operand.vmem [shape: f32[16,128], index: 7, kind: output, shape index: {}]  }
   0x1 LB: > { %s3471_s25 = sadd.s32 4294967295, %s3421_s24   ;;  %p3075_p0 = scmp.ge.s32.totalorder %s3421_s24, 1  ;;  %s3421_s24 = sphi %s3465_s24, %s17_s24  }
   0x2   : > { %p239_p1 = scmp.lt.s32.totalorder %s3421_s24, 3 }
   0x4   : > { %p240_p2 = pnand %p3075_p0, %p239_p1 }
   0x5   : > { %s3076_s28 = sshll.u32 (!%p240_p2), %s3471_s25, 3  ;;  %s3423_s9 = smov (!%p240_p2), 112  }
   0x6   : > { %243 = sbr.rel (%p240_p2) target bundleno = 1555 (0x613), region = 48  ;;  %p272_p3 = scmp.lt.s32.totalorder (!%p240_p2), %s3076_s28, 15 }
   0x7   : > { %p278_p4 = scmp.lt.s32.totalorder (!%p240_p2), %s3471_s25, 1 }
   0xb   : > { %vm412_vm0 = vcmask 1043456   ;;  %v3114_v0 = vld [vmem:[%s4602_s1 + $0x8] sm:$0xf]  ;;  %v3079_v1 = vld [vmem:[%s4602_s1 + $0x4] sm:$0xf]  ;;  %s4626_s28 = smov (!%p272_p3, %s3076_s28), 15 }
   0xc   : > { %3115 = vmatpush.msk.msra.mxu2 %vm412_vm0, %v3114_v0  ;;  %v311_v2 = vld [vmem:[%s4602_s1] sm:$0xf]  ;;  %3080 = vmatpush.msk.msra.mxu0 %vm412_vm0, %v3079_v1  ;;  %s3295_s10 = smul.u32 24, %s4626_s28  ;;  %vm379_vm1 = vcmask 31744   ;;  %vm581_vm2 = vcmask 1045504   ;;  %vm336_vm3 = vcmask 1046528  }
   0xd   : > { %3097 = vmatpush.msk.msra.mxu1 %vm412_vm0, %v311_v2  ;;  %vm873_vm4 = vcmask 64512   ;;  %vm789_vm5 = vcmask 1040384   ;;  %vm1235_vm6 = vcmask 130048   ;;  %s4628_s25 = smov (!%p278_p4, %s3471_s25), 1 }
   0xe   : > { %s3488_s13 = scalar_lea.vmem %s4601_s0, %s3295_s10  ;;  %s3424_s10 = smov 96  }
   0xf   : > { %v287_v3 = vld [vmem:[%s3488_s13] sm:$0xff]  ;;  %v288_v4 = vld [vmem:[%s3488_s13 + $0x8] sm:$0xff]  ;;  %v289_v9 = vld [vmem:[%s3488_s13 + $0x10] sm:$0x3]  ;;  %s3078_s22 = sshll.u32 %s4628_s25, 3 }
  0x10   : > { %v582_v5 = vrot.slane %v287_v3, 2  ;;  %v583_v6 = vrot.slane %v288_v4, 2  ;;  %v337_v7 = vrot.slane %v287_v3, 1  ;;  %v338_v8 = vrot.slane %v288_v4, 1  ;;  %3098 = vmatmul.msk.f32.vlgmr.msra.gmra.mxu1 %vm379_vm1, %v287_v3  ;;  %v290_v16 = vld [vmem:[%s3488_s13 + $0x18] sm:$0xff]  ;;  %v291_v17 = vld [vmem:[%s3488_s13 + $0x20] sm:$0xff]  ;;  %s281_s29 = scalar_lea.vmem %s4608_s7, %s3078_s22 }
  0x11   : > { %v585_v12 = vrot.slane %v289_v9, 2  ;;  %v340_v13 = vrot.slane %v289_v9, 1  ;;  %v587_v18 = vrot.slane %v290_v16, 2  ;;  %v588_v19 = vrot.slane %v291_v17, 2  ;;  %v292_v24 = vld [vmem:[%s3488_s13 + $0x28] sm:$0x3] }
  0x12   : > { %v584_v10 = vsel %vm581_vm2, %v582_v5, %v583_v6  ;;  %v339_v11 = vsel %vm336_vm3, %v337_v7, %v338_v8  ;;  %v342_v20 = vrot.slane %v290_v16, 1  ;;  %v343_v21 = vrot.slane %v291_v17, 1  ;;  %v293_v29 = vld [vmem:[%s3488_s13 + $0x30] sm:$0xff]  ;;  %v294_v30 = vld [vmem:[%s3488_s13 + $0x38] sm:$0xff]  ;;  %v295_v37 = vld [vmem:[%s3488_s13 + $0x40] sm:$0x3] }
  0x13   : > { %3116 = vmatmul.msk.f32.vlgmr.msra.gmra.mxu2 %vm379_vm1, %v584_v10  ;;  %3081 = vmatmul.msk.f32.vlgmr.msra.gmra.mxu0 %vm379_vm1, %v339_v11  ;;  %v586_v14 = vsel %vm581_vm2, %v583_v6, %v585_v12  ;;  %v341_v15 = vsel %vm336_vm3, %v338_v8, %v340_v13  ;;  %v589_v22 = vsel %vm581_vm2, %v587_v18, %v588_v19  ;;  %v590_v25 = vrot.slane %v292_v24, 2  ;;  %v296_v42 = vld [vmem:[%s3488_s13 + $0x48] sm:$0xff]  ;;  %v297_v43 = vld [vmem:[%s3488_s13 + $0x50] sm:$0xff]  ;;  %v298_v50 = vld [vmem:[%s3488_s13 + $0x58] sm:$0x3] }
  0x14   : > { %v344_v23 = vsel %vm336_vm3, %v342_v20, %v343_v21  ;;  %v345_v26 = vrot.slane %v292_v24, 1  ;;  %v592_v31 = vrot.slane %v293_v29, 2  ;;  %v593_v32 = vrot.slane %v294_v30, 2  ;;  %v299_v55 = vld [vmem:[%s3488_s13 + $0x60] sm:$0xff]  ;;  %v300_v56 = vld [vmem:[%s3488_s13 + $0x68] sm:$0xff]  ;;  %v306_v18 = vld [vmem:[%s3488_s13 + $0x98] sm:$0xff] }
  0x15   : > { %v591_v27 = vsel %vm581_vm2, %v588_v19, %v590_v25  ;;  %v347_v33 = vrot.slane %v293_v29, 1  ;;  %v348_v34 = vrot.slane %v294_v30, 1  ;;  %v595_v38 = vrot.slane %v295_v37, 2  ;;  %v301_v63 = vld [vmem:[%s3488_s13 + $0x70] sm:$0x3]  ;;  %v303_v5 = vld [vmem:[%s3488_s13 + $0x80] sm:$0xff] }
  0x16   : > { %v346_v28 = vsel %vm336_vm3, %v343_v21, %v345_v26  ;;  %v594_v35 = vsel %vm581_vm2, %v592_v31, %v593_v32  ;;  %v350_v39 = vrot.slane %v295_v37, 1  ;;  %v597_v44 = vrot.slane %v296_v42, 2  ;;  %v304_v12 = vld [vmem:[%s3488_s13 + $0x88] sm:$0x3]  ;;  %v307_v25 = vld [vmem:[%s3488_s13 + $0xa0] sm:$0x3] }
  0x17   : > { %v349_v36 = vsel %vm336_vm3, %v347_v33, %v348_v34  ;;  %v596_v40 = vsel %vm581_vm2, %v593_v32, %v595_v38  ;;  %v598_v45 = vrot.slane %v297_v43, 2  ;;  %v352_v46 = vrot.slane %v296_v42, 1  ;;  %v309_v31 = vld [vmem:[%s3488_s13 + $0xb0] sm:$0xff]  ;;  %v870_v32 = vld [vmem:[%s4603_s2] sm:$0xff]  ;;  %v3132_v33 = vld [vmem:[%s4603_s2 + $0x8] sm:$0xff] }
  0x18   : > { %3099 = vmatmul.msk.f32.gmra.mxu1 %vm379_vm1, %v288_v4  ;;  %v351_v41 = vsel %vm336_vm3, %v348_v34, %v350_v39  ;;  %v353_v47 = vrot.slane %v297_v43, 1  ;;  %v600_v51 = vrot.slane %v298_v50, 2  ;;  %v355_v52 = vrot.slane %v298_v50, 1  ;;  %v302_v4 = vld [vmem:[%s3488_s13 + $0x78] sm:$0xff]  ;;  %1026 = vmatpush.msrb.mxu0 %v870_v32  ;;  %v3165_v38 = vld [vmem:[%s4603_s2 + $0x10] sm:$0xff] }
  0x19   : > { %v599_v48 = vsel %vm581_vm2, %v597_v44, %v598_v45  ;;  %v602_v57 = vrot.slane %v299_v55, 2  ;;  %v603_v58 = vrot.slane %v300_v56, 2  ;;  %v357_v59 = vrot.slane %v299_v55, 1  ;;  %921 = vmatpush.msra.mxu3 %v3132_v33  ;;  %1133 = vmatpush.msrb.mxu1 %v3165_v38 }
  0x1a   : > { %v354_v49 = vsel %vm336_vm3, %v352_v46, %v353_v47  ;;  %v601_v53 = vsel %vm581_vm2, %v598_v45, %v600_v51  ;;  %v356_v54 = vsel %vm336_vm3, %v353_v47, %v355_v52  ;;  %v358_v60 = vrot.slane %v300_v56, 1 }
  0x1b   : > { %3117 = vmatmul.msk.f32.gmra.mxu2 %vm379_vm1, %v586_v14  ;;  %3082 = vmatmul.msk.f32.gmra.mxu0 %vm379_vm1, %v341_v15  ;;  %v604_v61 = vsel %vm581_vm2, %v602_v57, %v603_v58  ;;  %v605_v0 = vrot.slane %v301_v63, 2  ;;  %v360_v1 = vrot.slane %v301_v63, 1  ;;  %v607_v6 = vrot.slane %v302_v4, 2 }
  0x1c   : > { %v359_v62 = vsel %vm336_vm3, %v357_v59, %v358_v60  ;;  %v608_v7 = vrot.slane %v303_v5, 2  ;;  %v362_v8 = vrot.slane %v302_v4, 1  ;;  %v363_v9 = vrot.slane %v303_v5, 1 }
  0x1d   : > { %v606_v2 = vsel %vm581_vm2, %v603_v58, %v605_v0  ;;  %v361_v3 = vsel %vm336_vm3, %v358_v60, %v360_v1  ;;  %v610_v13 = vrot.slane %v304_v12, 2  ;;  %v365_v14 = vrot.slane %v304_v12, 1 }
  0x1e   : > { %v609_v10 = vsel %vm581_vm2, %v607_v6, %v608_v7  ;;  %v364_v11 = vsel %vm336_vm3, %v362_v8, %v363_v9  ;;  %v613_v20 = vrot.slane %v306_v18, 2  ;;  %v615_v26 = vrot.slane %v307_v25, 2 }
  0x1f   : > { %v611_v15 = vsel %vm581_vm2, %v608_v7, %v610_v13  ;;  %v373_v37 = vrot.slane %v309_v31, 1 }
  0x20   : > { %3100 = vmatmul.msk.f32.gmra.mxu1 %vm379_vm1, %v290_v16  ;;  %v366_v16 = vsel %vm336_vm3, %v363_v9, %v365_v14 }
  0x23   : > { %3118 = vmatmul.msk.f32.gmra.mxu2 %vm379_vm1, %v589_v22  ;;  %3083 = vmatmul.msk.f32.gmra.mxu0 %vm379_vm1, %v344_v23  ;;  %v368_v22 = vrot.slane %v306_v18, 1 }
  0x28   : > { %3101 = vmatmul.msk.f32.gmra.mxu1 %vm379_vm1, %v291_v17  ;;  %v305_v17 = vld [vmem:[%s3488_s13 + $0x90] sm:$0xff] }
  0x29   : > { %v612_v19 = vrot.slane %v305_v17, 2  ;;  %v367_v21 = vrot.slane %v305_v17, 1 }
  0x2b   : > { %3119 = vmatmul.msk.f32.gmra.mxu2 %vm379_vm1, %v591_v27  ;;  %3084 = vmatmul.msk.f32.gmra.mxu0 %vm379_vm1, %v346_v28  ;;  %v614_v23 = vsel %vm581_vm2, %v612_v19, %v613_v20  ;;  %v369_v24 = vsel %vm336_vm3, %v367_v21, %v368_v22  ;;  %v370_v27 = vrot.slane %v307_v25, 1  ;;  %v616_v28 = vsel %vm581_vm2, %v613_v20, %v615_v26 }
  0x30   : > { %3102 = vmatmul.msk.f32.gmra.mxu1 %vm379_vm1, %v293_v29  ;;  %v371_v29 = vsel %vm336_vm3, %v368_v22, %v370_v27 }
  0x33   : > { %3120 = vmatmul.msk.f32.gmra.mxu2 %vm379_vm1, %v594_v35  ;;  %3085 = vmatmul.msk.f32.gmra.mxu0 %vm379_vm1, %v349_v36  ;;  %v618_v35 = vrot.slane %v309_v31, 2 }
  0x38   : > { %3103 = vmatmul.msk.f32.gmra.mxu1 %vm379_vm1, %v294_v30  ;;  %v308_v30 = vld [vmem:[%s3488_s13 + $0xa8] sm:$0xff] }
  0x39   : > { %v617_v34 = vrot.slane %v308_v30, 2  ;;  %v372_v36 = vrot.slane %v308_v30, 1 }
  0x3b   : > { %3121 = vmatmul.msk.f32.gmra.mxu2 %vm379_vm1, %v596_v40  ;;  %3086 = vmatmul.msk.f32.gmra.mxu0 %vm379_vm1, %v351_v41  ;;  %v619_v39 = vsel %vm581_vm2, %v617_v34, %v618_v35  ;;  %v374_v40 = vsel %vm336_vm3, %v372_v36, %v373_v37  ;;  %v310_v41 = vld [vmem:[%s3488_s13 + $0xb8] sm:$0x3] }
  0x40   : > { %3104 = vmatmul.msk.f32.gmra.mxu1 %vm379_vm1, %v296_v42  ;;  %v620_v42 = vrot.slane %v310_v41, 2 }
  0x42   : > { %v621_v44 = vsel %vm581_vm2, %v618_v35, %v620_v42 }
  0x43   : > { %3122 = vmatmul.msk.f32.gmra.mxu2 %vm379_vm1, %v599_v48  ;;  %3087 = vmatmul.msk.f32.gmra.mxu0 %vm379_vm1, %v354_v49  ;;  %v3606_v49 = vld [vmem:[%s4607_s6] ss:$0 sm:$0xff] }
  0x48   : > { %3105 = vmatmul.msk.f32.gmra.mxu1 %vm379_vm1, %v297_v43  ;;  %v375_v43 = vrot.slane %v310_v41, 1 }
  0x4a   : > { %v376_v45 = vsel %vm336_vm3, %v373_v37, %v375_v43 }
  0x4b   : > { %3123 = vmatmul.msk.f32.gmra.mxu2 %vm379_vm1, %v601_v53  ;;  %3088 = vmatmul.msk.f32.gmra.mxu0 %vm379_vm1, %v356_v54 }
  0x50   : > { %3106 = vmatmul.msk.f32.gmra.mxu1 %vm379_vm1, %v299_v55 }
  0x53   : > { %3124 = vmatmul.msk.f32.gmra.mxu2 %vm379_vm1, %v604_v61  ;;  %3089 = vmatmul.msk.f32.gmra.mxu0 %vm379_vm1, %v359_v62 }
  0x58   : > { %3107 = vmatmul.msk.f32.gmra.mxu1 %vm379_vm1, %v300_v56 }
  0x5b   : > { %3125 = vmatmul.msk.f32.gmra.mxu2 %vm379_vm1, %v606_v2  ;;  %3090 = vmatmul.msk.f32.gmra.mxu0 %vm379_vm1, %v361_v3 }
  0x60   : > { %3108 = vmatmul.msk.f32.gmra.mxu1 %vm379_vm1, %v302_v4 }
  0x63   : > { %3126 = vmatmul.msk.f32.gmra.mxu2 %vm379_vm1, %v609_v10  ;;  %3091 = vmatmul.msk.f32.gmra.mxu0 %vm379_vm1, %v364_v11 }
  0x68   : > { %3109 = vmatmul.msk.f32.gmra.mxu1 %vm379_vm1, %v303_v5 }
  0x6b   : > { %3127 = vmatmul.msk.f32.gmra.mxu2 %vm379_vm1, %v611_v15  ;;  %3092 = vmatmul.msk.f32.gmra.mxu0 %vm379_vm1, %v366_v16 }
  0x70   : > { %3110 = vmatmul.msk.f32.gmra.mxu1 %vm379_vm1, %v305_v17 }
  0x73   : > { %3128 = vmatmul.msk.f32.gmra.mxu2 %vm379_vm1, %v614_v23  ;;  %3093 = vmatmul.msk.f32.gmra.mxu0 %vm379_vm1, %v369_v24 }
  0x78   : > { %3111 = vmatmul.msk.f32.gmra.mxu1 %vm379_vm1, %v306_v18 }
  0x7b   : > { %3129 = vmatmul.msk.f32.gmra.mxu2 %vm379_vm1, %v616_v28  ;;  %3094 = vmatmul.msk.f32.gmra.mxu0 %vm379_vm1, %v371_v29 }
  0x80   : > { %3112 = vmatmul.msk.f32.gmra.mxu1 %vm379_vm1, %v308_v30 }
  0x83   : > { %3130 = vmatmul.msk.f32.gmra.mxu2 %vm379_vm1, %v619_v39  ;;  %3095 = vmatmul.msk.f32.gmra.mxu0 %vm379_vm1, %v374_v40 }
  0x88   : > { %3113 = vmatmul.msk.f32.gmra.mxu1 %vm379_vm1, %v309_v31 }
  0x8b   : > { %3131 = vmatmul.msk.f32.gmra.mxu2 %vm379_vm1, %v621_v44  ;;  %3096 = vmatmul.msk.f32.gmra.mxu0 %vm379_vm1, %v376_v45 }
  0x8d   : > { %v533_v46 = vpop.f32.mrf.mxu1 }
  0x90   : > { %v433_v47 = vpop.f32.mrf.mxu0 }
  0x91   : > { %v534_v48 = vadd.f32 %v533_v46, %v433_v47 }
  0x95   : > { %v536_v50 = vpop.f32.mrf.mxu1 }
  0x96   : > { %v676_v51 = vpop.f32.mrf.mxu2 }
  0x97   : > { %v724_v52 = vadd.f32 %v676_v51, %v534_v48 }
  0x98   : > { %v436_v53 = vpop.f32.mrf.mxu0 }
  0x99   : > { %v741_v54 = vadd.f32 %v3606_v49, %v724_v52  ;;  %v537_v55 = vadd.f32 %v536_v50, %v436_v53 }
  0x9b   : > { %v757_v56 = vmax.f32 %v741_v54, 0.0 }
  0x9d   : > { %3133 = vmatmul.msk.f32.vlgmr.msra.gmra.mxu3 %vm873_vm4, %v757_v56  ;;  %v790_v57 = vrot.slane %v757_v56, 7  ;;  %v539_v58 = vpop.f32.mrf.mxu1  ;;  %v830_v3 = vrot.slane %v757_v56, 1 }
  0x9e   : > { %v679_v59 = vpop.f32.mrf.mxu2 }
  0x9f   : > { %v725_v60 = vadd.f32 %v679_v59, %v537_v55  ;;  %v822_v61 = vsel %vm789_vm5, 0.0, %v790_v57 }
  0xa0   : > { %3149 = vmatmul.msk.f32.vlgmr.msrb.gmra.mxu0 %vm873_vm4, %v822_v61  ;;  %v439_v62 = vpop.f32.mrf.mxu0 }
  0xa1   : > { %v742_v63 = vadd.f32 %v3606_v49, %v725_v60  ;;  %v540_v0 = vadd.f32 %v539_v58, %v439_v62 }
  0xa3   : > { %v758_v1 = vmax.f32 %v742_v63, 0.0 }
  0xa5   : > { %3134 = vmatmul.msk.f32.gmra.mxu3 %vm873_vm4, %v758_v1  ;;  %v791_v2 = vrot.slane %v758_v1, 7  ;;  %v831_v4 = vrot.slane %v758_v1, 1  ;;  %v542_v5 = vpop.f32.mrf.mxu1 }
  0xa6   : > { %v682_v6 = vpop.f32.mrf.mxu2 }
  0xa7   : > { %v726_v7 = vadd.f32 %v682_v6, %v540_v0  ;;  %v792_v8 = vsel %vm789_vm5, %v790_v57, %v791_v2  ;;  %v832_v9 = vsel %vm336_vm3, %v830_v3, %v831_v4  ;;  %v862_v18 = vsel %vm336_vm3, %v831_v4, 0.0 }
  0xa8   : > { %3150 = vmatmul.msk.f32.gmra.mxu0 %vm873_vm4, %v792_v8  ;;  %3166 = vmatmul.msk.f32.vlgmr.msrb.gmra.mxu1 %vm873_vm4, %v832_v9  ;;  %v442_v10 = vpop.f32.mrf.mxu0 }
  0xa9   : > { %v743_v11 = vadd.f32 %v3606_v49, %v726_v7  ;;  %v543_v12 = vadd.f32 %v542_v5, %v442_v10 }
  0xab   : > { %v759_v13 = vmax.f32 %v743_v11, 0.0 }
  0xad   : > { %3135 = vmatmul.msk.f32.gmra.mxu3 %vm873_vm4, %v759_v13  ;;  %v545_v14 = vpop.f32.mrf.mxu1  ;;  %v793_v15 = vrot.slane %v759_v13, 7  ;;  %v833_v24 = vrot.slane %v759_v13, 1 }
  0xae   : > { %v685_v16 = vpop.f32.mrf.mxu2 }
  0xaf   : > { %v727_v17 = vadd.f32 %v685_v16, %v543_v12  ;;  %v823_v19 = vsel %vm789_vm5, 0.0, %v793_v15 }
  0xb0   : > { %3167 = vmatmul.msk.f32.gmra.mxu1 %vm873_vm4, %v862_v18  ;;  %v445_v20 = vpop.f32.mrf.mxu0  ;;  %3151 = vmatmul.msk.f32.gmra.mxu0 %vm873_vm4, %v823_v19 }
  0xb1   : > { %v744_v21 = vadd.f32 %v3606_v49, %v727_v17  ;;  %v546_v22 = vadd.f32 %v545_v14, %v445_v20 }
  0xb3   : > { %v760_v23 = vmax.f32 %v744_v21, 0.0 }
  0xb5   : > { %3136 = vmatmul.msk.f32.gmra.mxu3 %vm873_vm4, %v760_v23  ;;  %v834_v25 = vrot.slane %v760_v23, 1  ;;  %v548_v26 = vpop.f32.mrf.mxu1  ;;  %v794_v27 = vrot.slane %v760_v23, 7 }
  0xb6   : > { %v688_v28 = vpop.f32.mrf.mxu2 }
  0xb7   : > { %v728_v29 = vadd.f32 %v688_v28, %v546_v22  ;;  %v835_v30 = vsel %vm336_vm3, %v833_v24, %v834_v25  ;;  %v795_v31 = vsel %vm789_vm5, %v793_v15, %v794_v27  ;;  %v863_v40 = vsel %vm336_vm3, %v834_v25, 0.0 }
  0xb8   : > { %3168 = vmatmul.msk.f32.gmra.mxu1 %vm873_vm4, %v835_v30  ;;  %v448_v32 = vpop.f32.mrf.mxu0  ;;  %3152 = vmatmul.msk.f32.gmra.mxu0 %vm873_vm4, %v795_v31 }
  0xb9   : > { %v745_v33 = vadd.f32 %v3606_v49, %v728_v29  ;;  %v549_v34 = vadd.f32 %v548_v26, %v448_v32 }
  0xbb   : > { %v761_v35 = vmax.f32 %v745_v33, 0.0 }
  0xbd   : > { %3137 = vmatmul.msk.f32.gmra.mxu3 %vm873_vm4, %v761_v35  ;;  %v551_v36 = vpop.f32.mrf.mxu1  ;;  %v796_v37 = vrot.slane %v761_v35, 7  ;;  %v836_v46 = vrot.slane %v761_v35, 1 }
  0xbe   : > { %v691_v38 = vpop.f32.mrf.mxu2 }
  0xbf   : > { %v729_v39 = vadd.f32 %v691_v38, %v549_v34  ;;  %v824_v41 = vsel %vm789_vm5, 0.0, %v796_v37 }
  0xc0   : > { %3169 = vmatmul.msk.f32.gmra.mxu1 %vm873_vm4, %v863_v40  ;;  %v451_v42 = vpop.f32.mrf.mxu0  ;;  %3153 = vmatmul.msk.f32.gmra.mxu0 %vm873_vm4, %v824_v41 }
  0xc1   : > { %v746_v43 = vadd.f32 %v3606_v49, %v729_v39  ;;  %v552_v44 = vadd.f32 %v551_v36, %v451_v42 }
  0xc3   : > { %v762_v45 = vmax.f32 %v746_v43, 0.0 }
  0xc5   : > { %3138 = vmatmul.msk.f32.gmra.mxu3 %vm873_vm4, %v762_v45  ;;  %v837_v47 = vrot.slane %v762_v45, 1  ;;  %v554_v48 = vpop.f32.mrf.mxu1  ;;  %v797_v50 = vrot.slane %v762_v45, 7 }
  0xc6   : > { %v694_v51 = vpop.f32.mrf.mxu2 }
  0xc7   : > { %v730_v52 = vadd.f32 %v694_v51, %v552_v44  ;;  %v838_v53 = vsel %vm336_vm3, %v836_v46, %v837_v47  ;;  %v798_v54 = vsel %vm789_vm5, %v796_v37, %v797_v50  ;;  %v864_v63 = vsel %vm336_vm3, %v837_v47, 0.0 }
  0xc8   : > { %3170 = vmatmul.msk.f32.gmra.mxu1 %vm873_vm4, %v838_v53  ;;  %v454_v55 = vpop.f32.mrf.mxu0  ;;  %3154 = vmatmul.msk.f32.gmra.mxu0 %vm873_vm4, %v798_v54 }
  0xc9   : > { %v747_v56 = vadd.f32 %v3606_v49, %v730_v52  ;;  %v555_v57 = vadd.f32 %v554_v48, %v454_v55 }
  0xcb   : > { %v763_v58 = vmax.f32 %v747_v56, 0.0 }
  0xcd   : > { %3139 = vmatmul.msk.f32.gmra.mxu3 %vm873_vm4, %v763_v58  ;;  %v557_v59 = vpop.f32.mrf.mxu1  ;;  %v799_v60 = vrot.slane %v763_v58, 7  ;;  %v839_v5 = vrot.slane %v763_v58, 1 }
  0xce   : > { %v697_v61 = vpop.f32.mrf.mxu2 }
  0xcf   : > { %v731_v62 = vadd.f32 %v697_v61, %v555_v57  ;;  %v825_v0 = vsel %vm789_vm5, 0.0, %v799_v60 }
  0xd0   : > { %3171 = vmatmul.msk.f32.gmra.mxu1 %vm873_vm4, %v864_v63  ;;  %v457_v1 = vpop.f32.mrf.mxu0  ;;  %3155 = vmatmul.msk.f32.gmra.mxu0 %vm873_vm4, %v825_v0 }
  0xd1   : > { %v748_v2 = vadd.f32 %v3606_v49, %v731_v62  ;;  %v558_v3 = vadd.f32 %v557_v59, %v457_v1 }
  0xd3   : > { %v764_v4 = vmax.f32 %v748_v2, 0.0 }
  0xd5   : > { %3140 = vmatmul.msk.f32.gmra.mxu3 %vm873_vm4, %v764_v4  ;;  %v840_v6 = vrot.slane %v764_v4, 1  ;;  %v560_v7 = vpop.f32.mrf.mxu1  ;;  %v800_v8 = vrot.slane %v764_v4, 7 }
  0xd6   : > { %v700_v9 = vpop.f32.mrf.mxu2 }
  0xd7   : > { %v732_v10 = vadd.f32 %v700_v9, %v558_v3  ;;  %v841_v11 = vsel %vm336_vm3, %v839_v5, %v840_v6  ;;  %v801_v12 = vsel %vm789_vm5, %v799_v60, %v800_v8  ;;  %v865_v21 = vsel %vm336_vm3, %v840_v6, 0.0  ;;  %v1233_v6 = vld [vmem:[%s4604_s3 + $0x8] sm:$0xff] }
  0xd8   : > { %3172 = vmatmul.msk.f32.gmra.mxu1 %vm873_vm4, %v841_v11  ;;  %v460_v13 = vpop.f32.mrf.mxu0  ;;  %3156 = vmatmul.msk.f32.gmra.mxu0 %vm873_vm4, %v801_v12 }
  0xd9   : > { %v749_v14 = vadd.f32 %v3606_v49, %v732_v10  ;;  %v561_v15 = vadd.f32 %v560_v7, %v460_v13  ;;  %1298 = vmatpush.msrb.mxu2 %v1233_v6 }
  0xdb   : > { %v765_v16 = vmax.f32 %v749_v14, 0.0 }
  0xdd   : > { %3141 = vmatmul.msk.f32.gmra.mxu3 %vm873_vm4, %v765_v16  ;;  %v563_v17 = vpop.f32.mrf.mxu1  ;;  %v802_v18 = vrot.slane %v765_v16, 7  ;;  %v842_v27 = vrot.slane %v765_v16, 1 }
  0xde   : > { %v703_v19 = vpop.f32.mrf.mxu2 }
  0xdf   : > { %v733_v20 = vadd.f32 %v703_v19, %v561_v15  ;;  %v826_v22 = vsel %vm789_vm5, 0.0, %v802_v18  ;;  %v1232_v19 = vld [vmem:[%s4604_s3] sm:$0xff] }
  0xe0   : > { %3173 = vmatmul.msk.f32.gmra.mxu1 %vm873_vm4, %v865_v21  ;;  %v463_v23 = vpop.f32.mrf.mxu0  ;;  %3157 = vmatmul.msk.f32.gmra.mxu0 %vm873_vm4, %v826_v22 }
  0xe1   : > { %v750_v24 = vadd.f32 %v3606_v49, %v733_v20  ;;  %v564_v25 = vadd.f32 %v563_v17, %v463_v23  ;;  %1299 = vmatpush.msrb.mxu2 %v1232_v19 }
  0xe3   : > { %v766_v26 = vmax.f32 %v750_v24, 0.0 }
  0xe5   : > { %3142 = vmatmul.msk.f32.gmra.mxu3 %vm873_vm4, %v766_v26  ;;  %v843_v28 = vrot.slane %v766_v26, 1  ;;  %v566_v29 = vpop.f32.mrf.mxu1  ;;  %v803_v30 = vrot.slane %v766_v26, 7 }
  0xe6   : > { %v706_v31 = vpop.f32.mrf.mxu2 }
  0xe7   : > { %v734_v32 = vadd.f32 %v706_v31, %v564_v25  ;;  %v844_v33 = vsel %vm336_vm3, %v842_v27, %v843_v28  ;;  %v804_v34 = vsel %vm789_vm5, %v802_v18, %v803_v30  ;;  %v866_v43 = vsel %vm336_vm3, %v843_v28, 0.0 }
  0xe8   : > { %3174 = vmatmul.msk.f32.gmra.mxu1 %vm873_vm4, %v844_v33  ;;  %v466_v35 = vpop.f32.mrf.mxu0  ;;  %3158 = vmatmul.msk.f32.gmra.mxu0 %vm873_vm4, %v804_v34 }
  0xe9   : > { %v751_v36 = vadd.f32 %v3606_v49, %v734_v32  ;;  %v567_v37 = vadd.f32 %v566_v29, %v466_v35 }
  0xeb   : > { %v767_v38 = vmax.f32 %v751_v36, 0.0 }
  0xed   : > { %3143 = vmatmul.msk.f32.gmra.mxu3 %vm873_vm4, %v767_v38  ;;  %v569_v39 = vpop.f32.mrf.mxu1  ;;  %v805_v40 = vrot.slane %v767_v38, 7  ;;  %v845_v50 = vrot.slane %v767_v38, 1 }
  0xee   : > { %v709_v41 = vpop.f32.mrf.mxu2 }
  0xef   : > { %v735_v42 = vadd.f32 %v709_v41, %v567_v37  ;;  %v827_v44 = vsel %vm789_vm5, 0.0, %v805_v40  ;;  %v3713_v37 = vld [vmem:[%s4607_s6 + $0x1] ss:$0 sm:$0xff] }
  0xf0   : > { %3175 = vmatmul.msk.f32.gmra.mxu1 %vm873_vm4, %v866_v43  ;;  %v469_v45 = vpop.f32.mrf.mxu0  ;;  %3159 = vmatmul.msk.f32.gmra.mxu0 %vm873_vm4, %v827_v44 }
  0xf1   : > { %v752_v46 = vadd.f32 %v3606_v49, %v735_v42  ;;  %v570_v47 = vadd.f32 %v569_v39, %v469_v45 }
  0xf3   : > { %v768_v48 = vmax.f32 %v752_v46, 0.0 }
  0xf5   : > { %3144 = vmatmul.msk.f32.gmra.mxu3 %vm873_vm4, %v768_v48  ;;  %v846_v51 = vrot.slane %v768_v48, 1  ;;  %v572_v52 = vpop.f32.mrf.mxu1  ;;  %v806_v53 = vrot.slane %v768_v48, 7 }
  0xf6   : > { %v712_v54 = vpop.f32.mrf.mxu2 }
  0xf7   : > { %v736_v55 = vadd.f32 %v712_v54, %v570_v47  ;;  %v847_v56 = vsel %vm336_vm3, %v845_v50, %v846_v51  ;;  %v807_v57 = vsel %vm789_vm5, %v805_v40, %v806_v53  ;;  %v867_v2 = vsel %vm336_vm3, %v846_v51, 0.0 }
  0xf8   : > { %3176 = vmatmul.msk.f32.gmra.mxu1 %vm873_vm4, %v847_v56  ;;  %v472_v58 = vpop.f32.mrf.mxu0  ;;  %3160 = vmatmul.msk.f32.gmra.mxu0 %vm873_vm4, %v807_v57 }
  0xf9   : > { %v753_v59 = vadd.f32 %v3606_v49, %v736_v55  ;;  %v573_v60 = vadd.f32 %v572_v52, %v472_v58 }
  0xfb   : > { %v769_v61 = vmax.f32 %v753_v59, 0.0 }
  0xfd   : > { %3145 = vmatmul.msk.f32.gmra.mxu3 %vm873_vm4, %v769_v61  ;;  %v808_v62 = vrot.slane %v769_v61, 7  ;;  %v575_v0 = vpop.f32.mrf.mxu1  ;;  %v848_v9 = vrot.slane %v769_v61, 1 }
  0xfe   : > { %v715_v63 = vpop.f32.mrf.mxu2 }
  0xff   : > { %v737_v1 = vadd.f32 %v715_v63, %v573_v60  ;;  %v828_v3 = vsel %vm789_vm5, 0.0, %v808_v62 }
 0x100   : > { %3177 = vmatmul.msk.f32.gmra.mxu1 %vm873_vm4, %v867_v2  ;;  %v475_v4 = vpop.f32.mrf.mxu0  ;;  %3161 = vmatmul.msk.f32.gmra.mxu0 %vm873_vm4, %v828_v3 }
 0x101   : > { %v754_v5 = vadd.f32 %v3606_v49, %v737_v1  ;;  %v576_v7 = vadd.f32 %v575_v0, %v475_v4 }
 0x103   : > { %v770_v8 = vmax.f32 %v754_v5, 0.0 }
 0x105   : > { %3146 = vmatmul.msk.f32.gmra.mxu3 %vm873_vm4, %v770_v8  ;;  %v849_v10 = vrot.slane %v770_v8, 1  ;;  %v809_v11 = vrot.slane %v770_v8, 7  ;;  %v578_v17 = vpop.f32.mrf.mxu1 }
 0x106   : > { %v718_v12 = vpop.f32.mrf.mxu2 }
 0x107   : > { %v738_v13 = vadd.f32 %v718_v12, %v576_v7  ;;  %v850_v14 = vsel %vm336_vm3, %v848_v9, %v849_v10  ;;  %v810_v15 = vsel %vm789_vm5, %v808_v62, %v809_v11  ;;  %v868_v25 = vsel %vm336_vm3, %v849_v10, 0.0 }
 0x108   : > { %3178 = vmatmul.msk.f32.gmra.mxu1 %vm873_vm4, %v850_v14  ;;  %v478_v16 = vpop.f32.mrf.mxu0  ;;  %3162 = vmatmul.msk.f32.gmra.mxu0 %vm873_vm4, %v810_v15 }
 0x109   : > { %v755_v18 = vadd.f32 %v3606_v49, %v738_v13  ;;  %v579_v20 = vadd.f32 %v578_v17, %v478_v16 }
 0x10b   : > { %v771_v21 = vmax.f32 %v755_v18, 0.0 }
 0x10d   : > { %3147 = vmatmul.msk.f32.gmra.mxu3 %vm873_vm4, %v771_v21  ;;  %v811_v22 = vrot.slane %v771_v21, 7  ;;  %v851_v29 = vrot.slane %v771_v21, 1 }
 0x10e   : > { %v721_v23 = vpop.f32.mrf.mxu2 }
 0x10f   : > { %v739_v24 = vadd.f32 %v721_v23, %v579_v20  ;;  %v829_v26 = vsel %vm789_vm5, 0.0, %v811_v22 }
 0x110   : > { %3179 = vmatmul.msk.f32.gmra.mxu1 %vm873_vm4, %v868_v25  ;;  %3163 = vmatmul.msk.f32.gmra.mxu0 %vm873_vm4, %v829_v26 }
 0x111   : > { %v756_v27 = vadd.f32 %v3606_v49, %v739_v24 }
 0x113   : > { %v772_v28 = vmax.f32 %v756_v27, 0.0 }
 0x115   : > { %3148 = vmatmul.msk.f32.gmra.mxu3 %vm873_vm4, %v772_v28  ;;  %v852_v30 = vrot.slane %v772_v28, 1  ;;  %v812_v31 = vrot.slane %v772_v28, 7 }
 0x117   : > { %v853_v32 = vsel %vm336_vm3, %v851_v29, %v852_v30  ;;  %v813_v33 = vsel %vm789_vm5, %v811_v22, %v812_v31  ;;  %v869_v35 = vsel %vm336_vm3, %v852_v30, 0.0 }
 0x118   : > { %3180 = vmatmul.msk.f32.gmra.mxu1 %vm873_vm4, %v853_v32  ;;  %3164 = vmatmul.msk.f32.gmra.mxu0 %vm873_vm4, %v813_v33 }
 0x11d   : > { %v1028_v34 = vpop.f32.mrf.mxu0 }
 0x120   : > { %v923_v36 = vpop.f32.mrf.mxu3  ;;  %3181 = vmatmul.msk.f32.gmra.mxu1 %vm873_vm4, %v869_v35 }
 0x121   : > { %v1029_v49 = vadd.f32 %v1028_v34, %v923_v36 }
 0x125   : > { %v1031_v38 = vpop.f32.mrf.mxu0  ;;  %v1135_v39 = vpop.f32.mrf.mxu1 }
 0x126   : > { %v1183_v40 = vadd.f32 %v1135_v39, %v1029_v49 }
 0x128   : > { %v1200_v41 = vadd.f32 %v3713_v37, %v1183_v40  ;;  %v926_v42 = vpop.f32.mrf.mxu3 }
 0x129   : > { %v1032_v44 = vadd.f32 %v1031_v38, %v926_v42 }
 0x12a   : > { %v1216_v43 = vmax.f32 %v1200_v41, 0.0 }
 0x12c   : > { %3182 = vmatmul.msk.f32.vlgmr.msrb.gmra.mxu2 %vm1235_vm6, %v1216_v43 }
 0x12d   : > { %v1138_v45 = vpop.f32.mrf.mxu1  ;;  %v1034_v46 = vpop.f32.mrf.mxu0 }
 0x12e   : > { %v1184_v47 = vadd.f32 %v1138_v45, %v1032_v44 }
 0x130   : > { %v1201_v48 = vadd.f32 %v3713_v37, %v1184_v47  ;;  %v929_v50 = vpop.f32.mrf.mxu3 }
 0x131   : > { %v1035_v52 = vadd.f32 %v1034_v46, %v929_v50 }
 0x132   : > { %v1217_v51 = vmax.f32 %v1201_v48, 0.0 }
 0x134   : > { %3183 = vmatmul.msk.f32.gmra.mxu2 %vm1235_vm6, %v1217_v51 }
 0x135   : > { %v1141_v53 = vpop.f32.mrf.mxu1  ;;  %v1037_v54 = vpop.f32.mrf.mxu0 }
 0x136   : > { %v1185_v55 = vadd.f32 %v1141_v53, %v1035_v52 }
 0x138   : > { %v1202_v56 = vadd.f32 %v3713_v37, %v1185_v55  ;;  %v932_v57 = vpop.f32.mrf.mxu3 }
 0x139   : > { %v1038_v59 = vadd.f32 %v1037_v54, %v932_v57 }
 0x13a   : > { %v1218_v58 = vmax.f32 %v1202_v56, 0.0 }
 0x13c   : > { %3184 = vmatmul.msk.f32.gmra.mxu2 %vm1235_vm6, %v1218_v58 }
 0x13d   : > { %v1144_v60 = vpop.f32.mrf.mxu1  ;;  %v1040_v61 = vpop.f32.mrf.mxu0 }
 0x13e   : > { %v1186_v62 = vadd.f32 %v1144_v60, %v1038_v59 }
 0x140   : > { %v1203_v63 = vadd.f32 %v3713_v37, %v1186_v62  ;;  %v935_v0 = vpop.f32.mrf.mxu3 }
 0x141   : > { %v1041_v2 = vadd.f32 %v1040_v61, %v935_v0 }
 0x142   : > { %v1219_v1 = vmax.f32 %v1203_v63, 0.0 }
 0x144   : > { %3185 = vmatmul.msk.f32.gmra.mxu2 %vm1235_vm6, %v1219_v1 }
 0x145   : > { %v1147_v3 = vpop.f32.mrf.mxu1  ;;  %v1043_v4 = vpop.f32.mrf.mxu0 }
 0x146   : > { %v1187_v5 = vadd.f32 %v1147_v3, %v1041_v2 }
 0x148   : > { %v1204_v6 = vadd.f32 %v3713_v37, %v1187_v5  ;;  %v938_v7 = vpop.f32.mrf.mxu3 }
 0x149   : > { %v1044_v9 = vadd.f32 %v1043_v4, %v938_v7 }
 0x14a   : > { %v1220_v8 = vmax.f32 %v1204_v6, 0.0 }
 0x14c   : > { %3186 = vmatmul.msk.f32.gmra.mxu2 %vm1235_vm6, %v1220_v8 }
 0x14d   : > { %v1150_v10 = vpop.f32.mrf.mxu1  ;;  %v1046_v11 = vpop.f32.mrf.mxu0 }
 0x14e   : > { %v1188_v12 = vadd.f32 %v1150_v10, %v1044_v9 }
 0x150   : > { %v1205_v13 = vadd.f32 %v3713_v37, %v1188_v12  ;;  %v941_v14 = vpop.f32.mrf.mxu3 }
 0x151   : > { %v1047_v16 = vadd.f32 %v1046_v11, %v941_v14 }
 0x152   : > { %v1221_v15 = vmax.f32 %v1205_v13, 0.0 }
 0x154   : > { %3187 = vmatmul.msk.f32.gmra.mxu2 %vm1235_vm6, %v1221_v15 }
 0x155   : > { %v1153_v17 = vpop.f32.mrf.mxu1  ;;  %v1049_v18 = vpop.f32.mrf.mxu0 }
 0x156   : > { %v1189_v19 = vadd.f32 %v1153_v17, %v1047_v16 }
 0x158   : > { %v1206_v20 = vadd.f32 %v3713_v37, %v1189_v19  ;;  %v944_v21 = vpop.f32.mrf.mxu3 }
 0x159   : > { %v1050_v23 = vadd.f32 %v1049_v18, %v944_v21 }
 0x15a   : > { %v1222_v22 = vmax.f32 %v1206_v20, 0.0 }
 0x15c   : > { %3188 = vmatmul.msk.f32.gmra.mxu2 %vm1235_vm6, %v1222_v22  ;;  %v3348_v22 = vld [vmem:[%s4607_s6 + $0x2] ss:$0 sm:$0xff] }
 0x15d   : > { %v1156_v24 = vpop.f32.mrf.mxu1  ;;  %v1052_v25 = vpop.f32.mrf.mxu0 }
 0x15e   : > { %v1190_v26 = vadd.f32 %v1156_v24, %v1050_v23 }
 0x160   : > { %v1207_v27 = vadd.f32 %v3713_v37, %v1190_v26  ;;  %v947_v28 = vpop.f32.mrf.mxu3 }
 0x161   : > { %v1053_v30 = vadd.f32 %v1052_v25, %v947_v28 }
 0x162   : > { %v1223_v29 = vmax.f32 %v1207_v27, 0.0 }
 0x164   : > { %3189 = vmatmul.msk.f32.gmra.mxu2 %vm1235_vm6, %v1223_v29 }
 0x165   : > { %v1159_v31 = vpop.f32.mrf.mxu1  ;;  %v1055_v32 = vpop.f32.mrf.mxu0 }
 0x166   : > { %v1191_v33 = vadd.f32 %v1159_v31, %v1053_v30 }
 0x168   : > { %v1208_v34 = vadd.f32 %v3713_v37, %v1191_v33  ;;  %v950_v35 = vpop.f32.mrf.mxu3 }
 0x169   : > { %v1056_v49 = vadd.f32 %v1055_v32, %v950_v35 }
 0x16a   : > { %v1224_v36 = vmax.f32 %v1208_v34, 0.0 }
 0x16c   : > { %3190 = vmatmul.msk.f32.gmra.mxu2 %vm1235_vm6, %v1224_v36 }
 0x16d   : > { %v1162_v38 = vpop.f32.mrf.mxu1  ;;  %v1058_v39 = vpop.f32.mrf.mxu0 }
 0x16e   : > { %v1192_v40 = vadd.f32 %v1162_v38, %v1056_v49 }
 0x170   : > { %v1209_v41 = vadd.f32 %v3713_v37, %v1192_v40  ;;  %v953_v42 = vpop.f32.mrf.mxu3 }
 0x171   : > { %v1059_v44 = vadd.f32 %v1058_v39, %v953_v42 }
 0x172   : > { %v1225_v43 = vmax.f32 %v1209_v41, 0.0 }
 0x174   : > { %3191 = vmatmul.msk.f32.gmra.mxu2 %vm1235_vm6, %v1225_v43 }
 0x175   : > { %v1165_v45 = vpop.f32.mrf.mxu1  ;;  %v1061_v46 = vpop.f32.mrf.mxu0 }
 0x176   : > { %v1193_v47 = vadd.f32 %v1165_v45, %v1059_v44 }
 0x178   : > { %v1210_v48 = vadd.f32 %v3713_v37, %v1193_v47  ;;  %v956_v50 = vpop.f32.mrf.mxu3 }
 0x179   : > { %v1062_v52 = vadd.f32 %v1061_v46, %v956_v50 }
 0x17a   : > { %v1226_v51 = vmax.f32 %v1210_v48, 0.0 }
 0x17c   : > { %3192 = vmatmul.msk.f32.gmra.mxu2 %vm1235_vm6, %v1226_v51 }
 0x17d   : > { %v1168_v53 = vpop.f32.mrf.mxu1  ;;  %v1064_v54 = vpop.f32.mrf.mxu0 }
 0x17e   : > { %v1194_v55 = vadd.f32 %v1168_v53, %v1062_v52 }
 0x180   : > { %v1211_v56 = vadd.f32 %v3713_v37, %v1194_v55  ;;  %v959_v57 = vpop.f32.mrf.mxu3 }
 0x181   : > { %v1065_v59 = vadd.f32 %v1064_v54, %v959_v57 }
 0x182   : > { %v1227_v58 = vmax.f32 %v1211_v56, 0.0 }
 0x184   : > { %3193 = vmatmul.msk.f32.gmra.mxu2 %vm1235_vm6, %v1227_v58 }
 0x185   : > { %v1171_v60 = vpop.f32.mrf.mxu1  ;;  %v1067_v61 = vpop.f32.mrf.mxu0 }
 0x186   : > { %v1195_v62 = vadd.f32 %v1171_v60, %v1065_v59 }
 0x188   : > { %v1212_v63 = vadd.f32 %v3713_v37, %v1195_v62  ;;  %v962_v0 = vpop.f32.mrf.mxu3 }
 0x189   : > { %v1068_v2 = vadd.f32 %v1067_v61, %v962_v0 }
 0x18a   : > { %v1228_v1 = vmax.f32 %v1212_v63, 0.0 }
 0x18c   : > { %3194 = vmatmul.msk.f32.gmra.mxu2 %vm1235_vm6, %v1228_v1 }
 0x18d   : > { %v1174_v3 = vpop.f32.mrf.mxu1  ;;  %v1070_v4 = vpop.f32.mrf.mxu0 }
 0x18e   : > { %v1196_v5 = vadd.f32 %v1174_v3, %v1068_v2 }
 0x190   : > { %v1213_v6 = vadd.f32 %v3713_v37, %v1196_v5  ;;  %v965_v7 = vpop.f32.mrf.mxu3 }
 0x191   : > { %v1071_v9 = vadd.f32 %v1070_v4, %v965_v7 }
 0x192   : > { %v1229_v8 = vmax.f32 %v1213_v6, 0.0 }
 0x194   : > { %3195 = vmatmul.msk.f32.gmra.mxu2 %vm1235_vm6, %v1229_v8 }
 0x195   : > { %v1177_v10 = vpop.f32.mrf.mxu1  ;;  %v1073_v12 = vpop.f32.mrf.mxu0 }
 0x196   : > { %v1197_v11 = vadd.f32 %v1177_v10, %v1071_v9 }
 0x198   : > { %v1214_v13 = vadd.f32 %v3713_v37, %v1197_v11  ;;  %v968_v14 = vpop.f32.mrf.mxu3 }
 0x199   : > { %v1074_v16 = vadd.f32 %v1073_v12, %v968_v14 }
 0x19a   : > { %v1230_v15 = vmax.f32 %v1214_v13, 0.0 }
 0x19c   : > { %3196 = vmatmul.msk.f32.gmra.mxu2 %vm1235_vm6, %v1230_v15 }
 0x19d   : > { %v1180_v17 = vpop.f32.mrf.mxu1 }
 0x19e   : > { %v1198_v18 = vadd.f32 %v1180_v17, %v1074_v16 }
 0x1a0   : > { %v1215_v19 = vadd.f32 %v3713_v37, %v1198_v18 }
 0x1a2   : > { %v1231_v20 = vmax.f32 %v1215_v19, 0.0 }
 0x1a4   : > { %3197 = vmatmul.msk.f32.gmra.mxu2 %vm1235_vm6, %v1231_v20 }
 0x1af   : > { %v1301_v21 = vpop.f32.mrf.mxu2 }
 0x1b0   : > { %v1302_v26 = vadd.f32 %v3348_v22, %v1301_v21 }
 0x1b7   : > { %v1304_v23 = vpop.f32.mrf.mxu2 }
 0x1b8   : > { %v3750_v24 = vadd.f32 %v3348_v22, %v1304_v23 }
 0x1ba   : > { %1353 = vrot.lane.b32.xlu0 %v3750_v24, %s3423_s9 }
 0x1bf   : > { %v1307_v25 = vpop.f32.mrf.mxu2 }
 0x1c0   : > { %v1308_v29 = vadd.f32 %v3348_v22, %v1307_v25 }
 0x1c2   : > { %1351 = vrot.lane.b32.xlu0 %v1302_v26, %s3423_s9  ;;  %v3321_v58 = vpack.i.bf16 %v1308_v29, %v1302_v26 }
 0x1c7   : > { %v1310_v37 = vpop.f32.mrf.mxu2 }
 0x1c8   : > { %v3755_v27 = vadd.f32 %v3348_v22, %v1310_v37 }
 0x1ca   : > { %1390 = vrot.lane.b32.xlu1 %v3755_v27, %s3423_s9  ;;  %v3316_v50 = vpack.i.bf16 %v3755_v27, %v3750_v24 }
 0x1cf   : > { %v1313_v28 = vpop.f32.mrf.mxu2 }
 0x1d0   : > { %v1314_v33 = vadd.f32 %v3348_v22, %v1313_v28 }
 0x1d2   : > { %1388 = vrot.lane.b32.xlu1 %v1308_v29, %s3423_s9 }
 0x1d7   : > { %v1316_v30 = vpop.f32.mrf.mxu2 }
 0x1d8   : > { %v3760_v31 = vadd.f32 %v3348_v22, %v1316_v30 }
 0x1da   : > { %1427 = vrot.lane.b32.xlu2 %v3760_v31, %s3423_s9 }
 0x1df   : > { %v1319_v32 = vpop.f32.mrf.mxu2 }
 0x1e0   : > { %v3764_v34 = vadd.f32 %v3348_v22, %v1319_v32 }
 0x1e2   : > { %1425 = vrot.lane.b32.xlu2 %v1314_v33, %s3423_s9  ;;  %1462 = vrot.lane.b32.xlu1 %v3764_v34, %s3423_s9  ;;  %v3311_v55 = vpack.i.bf16 %v3764_v34, %v1314_v33 }
 0x1e7   : > { %v1322_v35 = vpop.f32.mrf.mxu2 }
 0x1e8   : > { %v3769_v36 = vadd.f32 %v3348_v22, %v1322_v35 }
 0x1ea   : > { %1464 = vrot.lane.b32.xlu0 %v3769_v36, %s3423_s9  ;;  %v3306_v59 = vpack.i.bf16 %v3769_v36, %v3760_v31 }
 0x1ef   : > { %v1325_v49 = vpop.f32.mrf.mxu2 }
 0x1f0   : > { %v3773_v38 = vadd.f32 %v3348_v22, %v1325_v49 }
 0x1f2   : > { %1499 = vrot.lane.b32.xlu0 %v3773_v38, %s3423_s9 }
 0x1f7   : > { %v1328_v39 = vpop.f32.mrf.mxu2 }
 0x1f8   : > { %v3777_v40 = vadd.f32 %v3348_v22, %v1328_v39 }
 0x1fa   : > { %1501 = vrot.lane.b32.xlu2 %v3777_v40, %s3423_s9 }
 0x1ff   : > { %v1331_v41 = vpop.f32.mrf.mxu2 }
 0x200   : > { %v3781_v42 = vadd.f32 %v3348_v22, %v1331_v41 }
 0x202   : > { %1536 = vrot.lane.b32.xlu2 %v3781_v42, %s3423_s9 }
 0x207   : > { %v1334_v43 = vpop.f32.mrf.mxu2 }
 0x208   : > { %v3785_v44 = vadd.f32 %v3348_v22, %v1334_v43 }
 0x20a   : > { %1538 = vrot.lane.b32.xlu1 %v3785_v44, %s3423_s9 }
 0x20f   : > { %v1337_v45 = vpop.f32.mrf.mxu2 }
 0x210   : > { %v3789_v46 = vadd.f32 %v3348_v22, %v1337_v45 }
 0x212   : > { %1573 = vrot.lane.b32.xlu1 %v3789_v46, %s3423_s9 }
 0x217   : > { %v1340_v47 = vpop.f32.mrf.mxu2 }
 0x218   : > { %v3793_v48 = vadd.f32 %v3348_v22, %v1340_v47 }
 0x21a   : > { %3317 = vrot.lane.b32.xlu1 %v3316_v50, %s3424_s10  ;;  %1575 = vrot.lane.b32.xlu0 %v3793_v48, %s3423_s9 }
 0x21f   : > { %v1343_v51 = vpop.f32.mrf.mxu2 }
 0x220   : > { %v3800_v52 = vadd.f32 %v3348_v22, %v1343_v51 }
 0x222   : > { %1610 = vrot.lane.b32.xlu0 %v3800_v52, %s3423_s9 }
 0x227   : > { %v1346_v53 = vpop.f32.mrf.mxu2 }
 0x228   : > { %v3804_v54 = vadd.f32 %v3348_v22, %v1346_v53 }
 0x22a   : > { %3312 = vrot.lane.b32.xlu0 %v3311_v55, %s3424_s10  ;;  %1612 = vrot.lane.b32.xlu2 %v3804_v54, %s3423_s9  ;;  %v3326_v56 = vpack.i.bf16 %v3804_v54, %v3793_v48 }
 0x22c   : > { %v1354_v57 = vpop.permute.xlu0 %1353  ;;  %3327 = vrot.lane.b32.xlu1 %v3326_v56, %s3424_s10 }
 0x22d   : > { %3198 = vmatpush.xpose.msk.msrb.mxu3 %vm1235_vm6, %v1354_v57 }
 0x232   : > { %3322 = vrot.lane.b32.xlu0 %v3321_v58, %s3424_s10  ;;  %3307 = vrot.lane.b32.xlu2 %v3306_v59, %s3424_s10 }
 0x234   : > { %v1352_v60 = vpop.permute.xlu0 %1351  ;;  %v1428_v62 = vpop.permute.xlu2 %1427 }
 0x235   : > { %3199 = vmatpush.xpose.msk.msrb.mxu3 %vm1235_vm6, %v1352_v60 }
 0x238   : > { %3200 = vmatmul.msk.f32.vlgmr.msrb.gmra.mxu3 %vm1235_vm6, %v1302_v26 }
 0x23c   : > { %v1391_v61 = vpop.permute.xlu1 %1390  ;;  %v1426_v0 = vpop.permute.xlu2 %1425 }
 0x23d   : > { %3202 = vmatpush.xpose.msk.msra.mxu3 %vm1235_vm6, %v1391_v61 }
 0x240   : > { %3201 = vmatmul.msk.f32.gmra.mxu3 %vm1235_vm6, %v3750_v24 }
 0x244   : > { %v1389_v63 = vpop.permute.xlu1 %1388 }
 0x245   : > { %3203 = vmatpush.xpose.msk.msra.mxu3 %vm1235_vm6, %v1389_v63 }
 0x248   : > { %3204 = vmatmul.msk.f32.vlgmr.msra.gmra.mxu3 %vm1235_vm6, %v1308_v29 }
 0x249   : > { %3206 = vmatpush.xpose.msk.msrb.mxu3 %vm1235_vm6, %v1428_v62 }
 0x24d   : > { %3207 = vmatpush.xpose.msk.msrb.mxu3 %vm1235_vm6, %v1426_v0 }
 0x250   : > { %3205 = vmatmul.msk.f32.gmra.mxu3 %vm1235_vm6, %v3755_v27 }
 0x254   : > { %v1463_v2 = vpop.permute.xlu1 %1462  ;;  %v1502_v3 = vpop.permute.xlu2 %1501 }
 0x258   : > { %3208 = vmatmul.msk.f32.vlgmr.msrb.gmra.mxu3 %vm1235_vm6, %v1314_v33 }
 0x25c   : > { %v1465_v1 = vpop.permute.xlu0 %1464  ;;  %v1537_v5 = vpop.permute.xlu2 %1536 }
 0x25d   : > { %3210 = vmatpush.xpose.msk.msra.mxu3 %vm1235_vm6, %v1465_v1 }
 0x260   : > { %3209 = vmatmul.msk.f32.gmra.mxu3 %vm1235_vm6, %v3760_v31 }
 0x261   : > { %3211 = vmatpush.xpose.msk.msra.mxu3 %vm1235_vm6, %v1463_v2 }
 0x264   : > { %v1500_v4 = vpop.permute.xlu0 %1499 }
 0x265   : > { %3214 = vmatpush.xpose.msk.msrb.mxu3 %vm1235_vm6, %v1502_v3 }
 0x268   : > { %3212 = vmatmul.msk.f32.vlgmr.msra.gmra.mxu3 %vm1235_vm6, %v3764_v34 }
 0x269   : > { %3215 = vmatpush.xpose.msk.msrb.mxu3 %vm1235_vm6, %v1500_v4 }
 0x270   : > { %3213 = vmatmul.msk.f32.gmra.mxu3 %vm1235_vm6, %v3769_v36 }
 0x278   : > { %3216 = vmatmul.msk.f32.vlgmr.msrb.gmra.mxu3 %vm1235_vm6, %v3773_v38 }
 0x27c   : > { %v1539_v6 = vpop.permute.xlu1 %1538 }
 0x27d   : > { %3218 = vmatpush.xpose.msk.msra.mxu3 %vm1235_vm6, %v1539_v6 }
 0x280   : > { %3217 = vmatmul.msk.f32.gmra.mxu3 %vm1235_vm6, %v3777_v40 }
 0x281   : > { %3219 = vmatpush.xpose.msk.msra.mxu3 %vm1235_vm6, %v1537_v5 }
 0x284   : > { %v1574_v7 = vpop.permute.xlu1 %1573  ;;  %v1613_v8 = vpop.permute.xlu2 %1612 }
 0x288   : > { %3220 = vmatmul.msk.f32.vlgmr.msra.gmra.mxu3 %vm1235_vm6, %v3781_v42 }
 0x28c   : > { %v3318_v9 = vpop.permute.xlu1 %3317  ;;  %v1576_v10 = vpop.permute.xlu0 %1575 }
 0x28d   : > { %v3320_v11 = vunpack.i.h.bf16 %v3318_v9  ;;  %v3319_v12 = vunpack.i.l.bf16 %v3318_v9  ;;  %v3308_v13 = vpop.permute.xlu2 %3307  ;;  %3222 = vmatpush.xpose.msk.msrb.mxu3 %vm1235_vm6, %v1576_v10 }
 0x28e   : > { %v3309_v14 = vunpack.i.l.bf16 %v3308_v13  ;;  %v3310_v16 = vunpack.i.h.bf16 %v3308_v13 }
 0x28f   : > { %2071 = vmatpush.msra.mxu0 %v3319_v12  ;;  %2106 = vmatpush.msra.mxu1 %v3320_v11 }
 0x290   : > { %2141 = vmatpush.msra.mxu2 %v3309_v14  ;;  %3221 = vmatmul.msk.f32.gmra.mxu3 %vm1235_vm6, %v3785_v44 }
 0x291   : > { %3223 = vmatpush.xpose.msk.msrb.mxu3 %vm1235_vm6, %v1574_v7 }
 0x294   : > { %v1611_v15 = vpop.permute.xlu0 %1610 }
 0x295   : > { %3226 = vmatpush.xpose.msk.msra.mxu3 %vm1235_vm6, %v1613_v8 }
 0x298   : > { %3224 = vmatmul.msk.f32.vlgmr.msrb.gmra.mxu3 %vm1235_vm6, %v3789_v46 }
 0x299   : > { %3227 = vmatpush.xpose.msk.msra.mxu3 %vm1235_vm6, %v1611_v15 }
 0x29c   : > { %v3313_v17 = vpop.permute.xlu0 %3312 }
 0x29d   : > { %2176 = vmatpush.msrb.mxu3 %v3310_v16  ;;  %v3315_v18 = vunpack.i.h.bf16 %v3313_v17  ;;  %v3314_v19 = vunpack.i.l.bf16 %v3313_v17 }
 0x29e   : > { %v3328_v20 = vpop.permute.xlu1 %3327 }
 0x29f   : > { %v3329_v21 = vunpack.i.l.bf16 %v3328_v20  ;;  %2142 = vmatpush.msra.mxu2 %v3314_v19  ;;  %2177 = vmatpush.msrb.mxu3 %v3315_v18  ;;  %v3330_v25 = vunpack.i.h.bf16 %v3328_v20 }
 0x2a0   : > { %3225 = vmatmul.msk.f32.gmra.mxu3 %vm1235_vm6, %v3793_v48 }
 0x2a1   : > { %2281 = vmatpush.msrb.mxu2 %v3329_v21 }
 0x2a4   : > { %v3323_v22 = vpop.permute.xlu0 %3322 }
 0x2a5   : > { %v3325_v23 = vunpack.i.h.bf16 %v3323_v22  ;;  %v3324_v24 = vunpack.i.l.bf16 %v3323_v22 }
 0x2a7   : > { %2072 = vmatpush.msra.mxu0 %v3324_v24  ;;  %2107 = vmatpush.msra.mxu1 %v3325_v23 }
 0x2a8   : > { %3228 = vmatmul.msk.f32.vlgmr.msra.gmra.mxu3 %vm1235_vm6, %v3800_v52 }
 0x2a9   : > { %2316 = vmatpush.msra.mxu3 %v3330_v25 }
 0x2b0   : > { %3229 = vmatmul.msk.f32.gmra.mxu3 %vm1235_vm6, %v3804_v54 }
 0x2bb   : > { %v1380_v26 = vpop.f32.mrf.mxu3 }
 0x2bc   : > { %v3862_v37 = vmul.f32 0.25, %v1380_v26 }
 0x2be   : > { %v1661_v27 = vsel %vm1235_vm6, %v3862_v37, -inf }
 0x2bf   : > { %1662 = vmax.xlane.f32.xlu0 %v1661_v27 }
 0x2c3   : > { %v1383_v28 = vpop.f32.mrf.mxu3 }
 0x2c4   : > { %v3866_v29 = vmul.f32 0.25, %v1383_v28 }
 0x2c6   : > { %v1664_v30 = vsel %vm1235_vm6, %v3866_v29, -inf }
 0x2c7   : > { %1665 = vmax.xlane.f32.xlu0 %v1664_v30 }
 0x2cb   : > { %v1417_v31 = vpop.f32.mrf.mxu3 }
 0x2cc   : > { %v3870_v32 = vmul.f32 0.25, %v1417_v31 }
 0x2ce   : > { %v1667_v33 = vsel %vm1235_vm6, %v3870_v32, -inf }
 0x2cf   : > { %1668 = vmax.xlane.f32.xlu2 %v1667_v33 }
 0x2d3   : > { %v1420_v34 = vpop.f32.mrf.mxu3 }
 0x2d4   : > { %v3874_v35 = vmul.f32 0.25, %v1420_v34 }
 0x2d6   : > { %v1670_v36 = vsel %vm1235_vm6, %v3874_v35, -inf }
 0x2d7   : > { %1671 = vmax.xlane.f32.xlu1 %v1670_v36 }
 0x2db   : > { %v1454_v49 = vpop.f32.mrf.mxu3 }
 0x2dc   : > { %v3878_v39 = vmul.f32 0.25, %v1454_v49 }
 0x2de   : > { %v1673_v41 = vsel %vm1235_vm6, %v3878_v39, -inf }
 0x2df   : > { %1674 = vmax.xlane.f32.xlu1 %v1673_v41 }
 0x2e3   : > { %v1457_v43 = vpop.f32.mrf.mxu3 }
 0x2e4   : > { %v3882_v45 = vmul.f32 0.25, %v1457_v43 }
 0x2e6   : > { %v1676_v47 = vsel %vm1235_vm6, %v3882_v45, -inf }
 0x2e7   : > { %1677 = vmax.xlane.f32.xlu1 %v1676_v47 }
 0x2eb   : > { %v1491_v48 = vpop.f32.mrf.mxu3 }
 0x2ec   : > { %v3886_v50 = vmul.f32 0.25, %v1491_v48 }
 0x2ee   : > { %v1679_v51 = vsel %vm1235_vm6, %v3886_v50, -inf }
 0x2ef   : > { %1680 = vmax.xlane.f32.xlu2 %v1679_v51 }
 0x2f3   : > { %v1494_v53 = vpop.f32.mrf.mxu3 }
 0x2f4   : > { %v3890_v54 = vmul.f32 0.25, %v1494_v53 }
 0x2f6   : > { %v1682_v55 = vsel %vm1235_vm6, %v3890_v54, -inf }
 0x2f7   : > { %1683 = vmax.xlane.f32.xlu2 %v1682_v55 }
 0x2fb   : > { %v1528_v56 = vpop.f32.mrf.mxu3 }
 0x2fc   : > { %v3894_v57 = vmul.f32 0.25, %v1528_v56 }
 0x2fe   : > { %v1685_v58 = vsel %vm1235_vm6, %v3894_v57, -inf }
 0x2ff   : > { %1686 = vmax.xlane.f32.xlu1 %v1685_v58 }
 0x303   : > { %v1531_v59 = vpop.f32.mrf.mxu3 }
 0x304   : > { %v3898_v60 = vmul.f32 0.25, %v1531_v59 }
 0x306   : > { %v1688_v61 = vsel %vm1235_vm6, %v3898_v60, -inf }
 0x307   : > { %1689 = vmax.xlane.f32.xlu2 %v1688_v61 }
 0x30b   : > { %v1565_v62 = vpop.f32.mrf.mxu3 }
 0x30c   : > { %v3902_v63 = vmul.f32 0.25, %v1565_v62 }
 0x30e   : > { %v1691_v0 = vsel %vm1235_vm6, %v3902_v63, -inf }
 0x30f   : > { %1692 = vmax.xlane.f32.xlu2 %v1691_v0 }
 0x313   : > { %v1568_v1 = vpop.f32.mrf.mxu3 }
 0x314   : > { %v3906_v2 = vmul.f32 0.25, %v1568_v1 }
 0x316   : > { %v1694_v3 = vsel %vm1235_vm6, %v3906_v2, -inf }
 0x317   : > { %1695 = vmax.xlane.f32.xlu0 %v1694_v3 }
 0x31b   : > { %v1602_v4 = vpop.f32.mrf.mxu3 }
 0x31c   : > { %v3910_v5 = vmul.f32 0.25, %v1602_v4 }
 0x31e   : > { %v1697_v6 = vsel %vm1235_vm6, %v3910_v5, -inf }
 0x31f   : > { %1698 = vmax.xlane.f32.xlu2 %v1697_v6 }
 0x323   : > { %v1605_v7 = vpop.f32.mrf.mxu3 }
 0x324   : > { %v3914_v8 = vmul.f32 0.25, %v1605_v7 }
 0x326   : > { %v1700_v9 = vsel %vm1235_vm6, %v3914_v8, -inf }
 0x327   : > { %1701 = vmax.xlane.f32.xlu0 %v1700_v9 }
 0x32b   : > { %v1639_v10 = vpop.f32.mrf.mxu3 }
 0x32c   : > { %v3918_v11 = vmul.f32 0.25, %v1639_v10 }
 0x32e   : > { %v1703_v12 = vsel %vm1235_vm6, %v3918_v11, -inf }
 0x32f   : > { %1704 = vmax.xlane.f32.xlu0 %v1703_v12 }
 0x332   : > { %v1663_v13 = vpop.xlane.xlu0 %1662 }
 0x333   : > { %v1709_v14 = vsub.f32 %v3862_v37, %v1663_v13  ;;  %v1642_v15 = vpop.f32.mrf.mxu3 }
 0x334   : > { %v3923_v16 = vmul.f32 0.25, %v1642_v15 }
 0x335   : > { %v1725_v17 = vmul.f32 1.442695, %v1709_v14 }
 0x336   : > { %v1706_v18 = vsel %vm1235_vm6, %v3923_v16, -inf }
 0x337   : > { %3351 = vpow2.f32 %v1725_v17  ;;  %1707 = vmax.xlane.f32.xlu1 %v1706_v18 }
 0x33a   : > { %v1666_v19 = vpop.xlane.xlu0 %1665 }
 0x33b   : > { %v1710_v20 = vsub.f32 %v3866_v29, %v1666_v19 }
 0x33d   : > { %v3928_v21 = vpop.eup %3351  ;;  %v1727_v22 = vmul.f32 1.442695, %v1710_v20 }
 0x33e   : > { %v1757_v23 = vsel %vm1235_vm6, %v3928_v21, 0.0 }
 0x33f   : > { %3353 = vpow2.f32 %v1727_v22  ;;  %1758 = vadd.xlane.f32.xlu0 %v1757_v23 }
 0x342   : > { %v1669_v24 = vpop.xlane.xlu2 %1668 }
 0x343   : > { %v1711_v25 = vsub.f32 %v3870_v32, %v1669_v24 }
 0x345   : > { %v3933_v26 = vpop.eup %3353  ;;  %v1729_v37 = vmul.f32 1.442695, %v1711_v25 }
 0x346   : > { %v1760_v27 = vsel %vm1235_vm6, %v3933_v26, 0.0 }
 0x347   : > { %3355 = vpow2.f32 %v1729_v37  ;;  %1761 = vadd.xlane.f32.xlu1 %v1760_v27 }
 0x34a   : > { %v1672_v28 = vpop.xlane.xlu1 %1671 }
 0x34b   : > { %v1712_v29 = vsub.f32 %v3874_v35, %v1672_v28 }
 0x34d   : > { %v3938_v30 = vpop.eup %3355  ;;  %v1731_v31 = vmul.f32 1.442695, %v1712_v29 }
 0x34e   : > { %v1763_v33 = vsel %vm1235_vm6, %v3938_v30, 0.0 }
 0x34f   : > { %3357 = vpow2.f32 %v1731_v31  ;;  %1764 = vadd.xlane.f32.xlu1 %v1763_v33 }
 0x352   : > { %v1675_v32 = vpop.xlane.xlu1 %1674 }
 0x353   : > { %v1713_v34 = vsub.f32 %v3878_v39, %v1675_v32 }
 0x355   : > { %v3943_v36 = vpop.eup %3357  ;;  %v1733_v49 = vmul.f32 1.442695, %v1713_v34 }
 0x356   : > { %v1766_v41 = vsel %vm1235_vm6, %v3943_v36, 0.0 }
 0x357   : > { %3359 = vpow2.f32 %v1733_v49  ;;  %1767 = vadd.xlane.f32.xlu2 %v1766_v41 }
 0x35a   : > { %v1678_v35 = vpop.xlane.xlu1 %1677 }
 0x35b   : > { %v1714_v43 = vsub.f32 %v3882_v45, %v1678_v35 }
 0x35d   : > { %v3948_v47 = vpop.eup %3359  ;;  %v1735_v48 = vmul.f32 1.442695, %v1714_v43 }
 0x35e   : > { %v1769_v51 = vsel %vm1235_vm6, %v3948_v47, 0.0 }
 0x35f   : > { %3361 = vpow2.f32 %v1735_v48  ;;  %1770 = vadd.xlane.f32.xlu1 %v1769_v51 }
 0x362   : > { %v1681_v39 = vpop.xlane.xlu2 %1680 }
 0x363   : > { %v1715_v53 = vsub.f32 %v3886_v50, %v1681_v39 }
 0x365   : > { %v3953_v55 = vpop.eup %3361  ;;  %v1737_v56 = vmul.f32 1.442695, %v1715_v53 }
 0x366   : > { %v1772_v58 = vsel %vm1235_vm6, %v3953_v55, 0.0 }
 0x367   : > { %3363 = vpow2.f32 %v1737_v56  ;;  %1773 = vadd.xlane.f32.xlu2 %v1772_v58 }
 0x36a   : > { %v1684_v45 = vpop.xlane.xlu2 %1683 }
 0x36b   : > { %v1716_v59 = vsub.f32 %v3890_v54, %v1684_v45 }
 0x36d   : > { %v3958_v61 = vpop.eup %3363  ;;  %v1739_v62 = vmul.f32 1.442695, %v1716_v59 }
 0x36e   : > { %v1775_v0 = vsel %vm1235_vm6, %v3958_v61, 0.0 }
 0x36f   : > { %3365 = vpow2.f32 %v1739_v62  ;;  %1776 = vadd.xlane.f32.xlu2 %v1775_v0 }
 0x372   : > { %v1687_v50 = vpop.xlane.xlu1 %1686 }
 0x373   : > { %v1717_v1 = vsub.f32 %v3894_v57, %v1687_v50 }
 0x375   : > { %v3963_v3 = vpop.eup %3365  ;;  %v1741_v4 = vmul.f32 1.442695, %v1717_v1 }
 0x376   : > { %v1778_v6 = vsel %vm1235_vm6, %v3963_v3, 0.0 }
 0x377   : > { %3367 = vpow2.f32 %v1741_v4  ;;  %1779 = vadd.xlane.f32.xlu0 %v1778_v6 }
 0x37a   : > { %v3967_v54 = vpop.xlane.xlu2 %1689 }
 0x37d   : > { %v3969_v7 = vpop.eup %3367 }
 0x37e   : > { %v1781_v9 = vsel %vm1235_vm6, %v3969_v7, 0.0 }
 0x37f   : > { %1782 = vadd.xlane.f32.xlu1 %v1781_v9 }
 0x382   : > { %v1693_v10 = vpop.xlane.xlu2 %1692 }
 0x383   : > { %v1719_v12 = vsub.f32 %v3902_v63, %v1693_v10  ;;  %v3341_v10 = vpack.i.bf16 %v3781_v42, %v3773_v38  ;;  %v3336_v38 = vpack.i.bf16 %v3785_v44, %v3777_v40 }
 0x385   : > { %v1745_v57 = vmul.f32 1.442695, %v1719_v12 }
 0x387   : > { %3369 = vpow2.f32 %v1745_v57 }
 0x38a   : > { %v1696_v15 = vpop.xlane.xlu0 %1695 }
 0x38b   : > { %v1720_v63 = vsub.f32 %v3906_v2, %v1696_v15 }
 0x38d   : > { %v3974_v13 = vpop.eup %3369  ;;  %v1747_v37 = vmul.f32 1.442695, %v1720_v63 }
 0x38e   : > { %v1787_v14 = vsel %vm1235_vm6, %v3974_v13, 0.0 }
 0x38f   : > { %1788 = vadd.xlane.f32.xlu1 %v1787_v14  ;;  %v3331_v14 = vpack.i.bf16 %v3800_v52, %v3789_v46 }
 0x392   : > { %v1699_v17 = vpop.xlane.xlu2 %1698 }
 0x393   : > { %v1721_v18 = vsub.f32 %v3910_v5, %v1699_v17 }
 0x395   : > { %v1749_v19 = vmul.f32 1.442695, %v1721_v18 }
 0x397   : > { %3371 = vpow2.f32 %v1749_v19 }
 0x39a   : > { %v1702_v20 = vpop.xlane.xlu0 %1701 }
 0x39b   : > { %v1722_v22 = vsub.f32 %v3914_v8, %v1702_v20 }
 0x39d   : > { %v3980_v23 = vpop.eup %3371  ;;  %v1751_v24 = vmul.f32 1.442695, %v1722_v22 }
 0x39e   : > { %v1793_v25 = vsel %vm1235_vm6, %v3980_v23, 0.0 }
 0x39f   : > { %3373 = vpow2.f32 %v1751_v24  ;;  %1794 = vadd.xlane.f32.xlu0 %v1793_v25 }
 0x3a0   : > { %3375 = vpow2.f32 %v1747_v37 }
 0x3a2   : > { %v1705_v27 = vpop.xlane.xlu0 %1704 }
 0x3a3   : > { %v1723_v28 = vsub.f32 %v3918_v11, %v1705_v27 }
 0x3a5   : > { %v3986_v5 = vpop.eup %3373  ;;  %v1753_v29 = vmul.f32 1.442695, %v1723_v28 }
 0x3a6   : > { %v1796_v8 = vsel %vm1235_vm6, %v3986_v5, 0.0  ;;  %v3990_v31 = vpop.eup %3375 }
 0x3a7   : > { %3377 = vpow2.f32 %v1753_v29  ;;  %1797 = vadd.xlane.f32.xlu2 %v1796_v8  ;;  %v1790_v11 = vsel %vm1235_vm6, %v3990_v31, 0.0 }
 0x3aa   : > { %v1708_v2 = vpop.xlane.xlu1 %1707 }
 0x3ab   : > { %v1724_v33 = vsub.f32 %v3923_v16, %v1708_v2 }
 0x3ad   : > { %v3993_v32 = vpop.eup %3377  ;;  %v1755_v34 = vmul.f32 1.442695, %v1724_v33 }
 0x3ae   : > { %v1799_v49 = vsel %vm1235_vm6, %v3993_v32, 0.0 }
 0x3af   : > { %3379 = vpow2.f32 %v1755_v34  ;;  %1791 = vadd.xlane.f32.xlu2 %v1790_v11  ;;  %1800 = vadd.xlane.f32.xlu1 %v1799_v49 }
 0x3b2   : > { %v1759_v41 = vpop.xlane.xlu0 %1758 }
 0x3b3   : > { %3381 = vrcp.f32 %v1759_v41  ;;  %v1816_v53 = vand.u32 2147483648, %v1759_v41  ;;  %v1814_v58 = vand.u32 2147483647, %v1759_v41  ;;  %vm1810_vm8 = vweird.f32 %v1759_v41 }
 0x3b5   : > { %v3999_v35 = vpop.eup %3379  ;;  %v1817_v62 = vor.u32 1.1754944e-38, %v1816_v53  ;;  %vm1815_vm10 = vcmp.eq.f32.partialorder %v1814_v58, 8.507059e+37 }
 0x3b6   : > { %v1802_v43 = vsel %vm1235_vm6, %v3999_v35, 0.0 }
 0x3b7   : > { %1803 = vadd.xlane.f32.xlu0 %v1802_v43 }
 0x3b9   : > { %v3382_v16 = vpop.eup %3381 }
 0x3ba   : > { %v1806_v48 = vmul.f32 %v3382_v16, %v1759_v41  ;;  %v1762_v51 = vpop.xlane.xlu1 %1761  ;;  %vm1811_vm7 = vweird.f32 %v3382_v16 }
 0x3bb   : > { %3383 = vrcp.f32 %v1762_v51  ;;  %vm1812_vm9 = vmor %vm1810_vm8, %vm1811_vm7  ;;  %v1831_v57 = vand.u32 2147483648, %v1762_v51  ;;  %v1829_v15 = vand.u32 2147483647, %v1762_v51  ;;  %vm1825_vm12 = vweird.f32 %v1762_v51 }
 0x3bc   : > { %v1807_v39 = vsub.f32 1.0, %v1806_v48 }
 0x3bd   : > { %v1832_v42 = vor.u32 1.1754944e-38, %v1831_v57  ;;  %vm1830_vm14 = vcmp.eq.f32.partialorder %v1829_v15, 8.507059e+37 }
 0x3be   : > { %v1808_v56 = vmul.f32 %v3382_v16, %v1807_v39 }
 0x3c0   : > { %v1809_v45 = vadd.f32 %v3382_v16, %v1808_v56 }
 0x3c1   : > { %v3384_v59 = vpop.eup %3383 }
 0x3c2   : > { %v1813_v0 = vsel %vm1812_vm9, %v3382_v16, %v1809_v45  ;;  %v1821_v50 = vmul.f32 %v3384_v59, %v1762_v51  ;;  %v1765_v1 = vpop.xlane.xlu1 %1764  ;;  %vm1826_vm11 = vweird.f32 %v3384_v59 }
 0x3c3   : > { %v1818_v4 = vsel %vm1815_vm10, %v1817_v62, %v1813_v0  ;;  %3385 = vrcp.f32 %v1765_v1  ;;  %vm1827_vm13 = vmor %vm1825_vm12, %vm1826_vm11  ;;  %v1846_v22 = vand.u32 2147483648, %v1765_v1  ;;  %v1844_v25 = vand.u32 2147483647, %v1765_v1 }
 0x3c4   : > { %v1819_v6 = vmul.f32 %v3928_v21, %v1818_v4  ;;  %v1822_v9 = vsub.f32 1.0, %v1821_v50  ;;  %vm1840_vm0 = vweird.f32 %v1765_v1 }
 0x3c5   : > { %v1847_v44 = vor.u32 1.1754944e-38, %v1846_v22  ;;  %vm1845_vm2 = vcmp.eq.f32.partialorder %v1844_v25, 8.507059e+37 }
 0x3c6   : > { %v1823_v12 = vmul.f32 %v3384_v59, %v1822_v9  ;;  %3230 = vmatmul.msk.f32.vlgmr.msra.gmra.mxu0 %vm1235_vm6, %v1819_v6 }
 0x3c7   : > { %3342 = vrot.lane.b32.xlu2 %v3341_v10, %s3424_s10 }
 0x3c8   : > { %v1824_v17 = vadd.f32 %v3384_v59, %v1823_v12  ;;  %3332 = vrot.lane.b32.xlu1 %v3331_v14, %s3424_s10 }
 0x3c9   : > { %v3386_v21 = vpop.eup %3385 }
 0x3ca   : > { %v1836_v18 = vmul.f32 %v3386_v21, %v1765_v1  ;;  %v1768_v19 = vpop.xlane.xlu2 %1767  ;;  %v1828_v20 = vsel %vm1827_vm13, %v3384_v59, %v1824_v17  ;;  %vm1841_vm15 = vweird.f32 %v3386_v21  ;;  %v1718_v59 = vsub.f32 %v3898_v60, %v3967_v54 }
 0x3cb   : > { %3387 = vrcp.f32 %v1768_v19  ;;  %3337 = vrot.lane.b32.xlu0 %v3336_v38, %s3424_s10  ;;  %v1833_v52 = vsel %vm1830_vm14, %v1832_v42, %v1828_v20  ;;  %vm1842_vm1 = vmor %vm1840_vm0, %vm1841_vm15  ;;  %v1861_v34 = vand.u32 2147483648, %v1768_v19  ;;  %v1859_v11 = vand.u32 2147483647, %v1768_v19 }
 0x3cc   : > { %v1837_v46 = vsub.f32 1.0, %v1836_v18  ;;  %v1834_v63 = vmul.f32 %v3933_v26, %v1833_v52  ;;  %vm1855_vm4 = vweird.f32 %v1768_v19 }
 0x3cd   : > { %v1862_v43 = vor.u32 1.1754944e-38, %v1861_v34  ;;  %vm1860_vm7 = vcmp.eq.f32.partialorder %v1859_v11, 8.507059e+37 }
 0x3ce   : > { %v1838_v24 = vmul.f32 %v3386_v21, %v1837_v46  ;;  %3231 = vmatmul.msk.f32.gmra.mxu0 %vm1235_vm6, %v1834_v63 }
 0x3d0   : > { %v1839_v37 = vadd.f32 %v3386_v21, %v1838_v24 }
 0x3d1   : > { %v3388_v40 = vpop.eup %3387 }
 0x3d2   : > { %v1843_v27 = vsel %vm1842_vm1, %v3386_v21, %v1839_v37  ;;  %v1851_v28 = vmul.f32 %v3388_v40, %v1768_v19  ;;  %v1771_v29 = vpop.xlane.xlu1 %1770  ;;  %vm1856_vm3 = vweird.f32 %v3388_v40 }
 0x3d3   : > { %v1848_v8 = vsel %vm1845_vm2, %v1847_v44, %v1843_v27  ;;  %3389 = vrcp.f32 %v1771_v29  ;;  %vm1857_vm5 = vmor %vm1855_vm4, %vm1856_vm3  ;;  %v1874_v45 = vand.u32 2147483647, %v1771_v29  ;;  %vm1870_vm9 = vweird.f32 %v1771_v29 }
 0x3d4   : > { %v1849_v2 = vmul.f32 %v3938_v30, %v1848_v8  ;;  %v1852_v33 = vsub.f32 1.0, %v1851_v28  ;;  %v1876_v30 = vand.u32 2147483648, %v1771_v29 }
 0x3d5   : > { %vm1875_vm11 = vcmp.eq.f32.partialorder %v1874_v45, 8.507059e+37 }
 0x3d6   : > { %v1853_v26 = vmul.f32 %v3388_v40, %v1852_v33  ;;  %3232 = vmatmul.msk.f32.vlgmr.msra.gmra.mxu1 %vm1235_vm6, %v1849_v2  ;;  %v1877_v50 = vor.u32 1.1754944e-38, %v1876_v30 }
 0x3d8   : > { %v1854_v49 = vadd.f32 %v3388_v40, %v1853_v26 }
 0x3d9   : > { %v3390_v41 = vpop.eup %3389 }
 0x3da   : > { %v1866_v16 = vmul.f32 %v3390_v41, %v1771_v29  ;;  %v1774_v48 = vpop.xlane.xlu2 %1773  ;;  %v1858_v51 = vsel %vm1857_vm5, %v3388_v40, %v1854_v49  ;;  %vm1871_vm8 = vweird.f32 %v3390_v41 }
 0x3db   : > { %3391 = vrcp.f32 %v1774_v48  ;;  %v1863_v53 = vsel %vm1860_vm7, %v1862_v43, %v1858_v51  ;;  %vm1872_vm10 = vmor %vm1870_vm9, %vm1871_vm8  ;;  %v1891_v14 = vand.u32 2147483648, %v1774_v48  ;;  %v1889_v60 = vand.u32 2147483647, %v1774_v48 }
 0x3dc   : > { %v1867_v39 = vsub.f32 1.0, %v1866_v16  ;;  %v1864_v56 = vmul.f32 %v3943_v36, %v1863_v53  ;;  %v1743_v36 = vmul.f32 1.442695, %v1718_v59  ;;  %vm1885_vm13 = vweird.f32 %v1774_v48 }
 0x3dd   : > { %v1892_v17 = vor.u32 1.1754944e-38, %v1891_v14  ;;  %vm1890_vm15 = vcmp.eq.f32.partialorder %v1889_v60, 8.507059e+37 }
 0x3de   : > { %v1868_v58 = vmul.f32 %v3390_v41, %v1867_v39  ;;  %3233 = vmatmul.msk.f32.gmra.mxu1 %vm1235_vm6, %v1864_v56 }
 0x3e0   : > { %v1869_v62 = vadd.f32 %v3390_v41, %v1868_v58 }
 0x3e1   : > { %v3392_v0 = vpop.eup %3391 }
 0x3e2   : > { %v1873_v1 = vsel %vm1872_vm10, %v3390_v41, %v1869_v62  ;;  %v1881_v4 = vmul.f32 %v3392_v0, %v1774_v48  ;;  %v1777_v6 = vpop.xlane.xlu2 %1776  ;;  %vm1886_vm12 = vweird.f32 %v3392_v0 }
 0x3e3   : > { %v1878_v9 = vsel %vm1875_vm11, %v1877_v50, %v1873_v1  ;;  %3393 = vrcp.f32 %v1777_v6  ;;  %vm1887_vm14 = vmor %vm1885_vm13, %vm1886_vm12  ;;  %v1906_v19 = vand.u32 2147483648, %v1777_v6  ;;  %v1904_v22 = vand.u32 2147483647, %v1777_v6 }
 0x3e4   : > { %v1879_v10 = vmul.f32 %v3948_v47, %v1878_v9  ;;  %v1882_v12 = vsub.f32 1.0, %v1881_v4  ;;  %3395 = vpow2.f32 %v1743_v36  ;;  %vm1900_vm1 = vweird.f32 %v1777_v6 }
 0x3e5   : > { %v1907_v25 = vor.u32 1.1754944e-38, %v1906_v19  ;;  %vm1905_vm3 = vcmp.eq.f32.partialorder %v1904_v22, 8.507059e+37 }
 0x3e6   : > { %v1883_v57 = vmul.f32 %v3392_v0, %v1882_v12  ;;  %3234 = vmatmul.msk.f32.vlgmr.msra.gmra.mxu2 %vm1235_vm6, %v1879_v10 }
 0x3e8   : > { %v1884_v54 = vadd.f32 %v3392_v0, %v1883_v57 }
 0x3e9   : > { %v3394_v15 = vpop.eup %3393 }
 0x3ea   : > { %v1896_v21 = vmul.f32 %v3394_v15, %v1777_v6  ;;  %v1780_v38 = vpop.xlane.xlu0 %1779  ;;  %v1888_v42 = vsel %vm1887_vm14, %v3392_v0, %v1884_v54  ;;  %v4025_v46 = vpop.eup %3395  ;;  %vm1901_vm0 = vweird.f32 %v3394_v15 }
 0x3eb   : > { %3397 = vrcp.f32 %v1780_v38  ;;  %v1893_v47 = vsel %vm1890_vm15, %v1892_v17, %v1888_v42  ;;  %vm1902_vm2 = vmor %vm1900_vm1, %vm1901_vm0  ;;  %v1784_v37 = vsel %vm1235_vm6, %v4025_v46, 0.0  ;;  %v1921_v29 = vand.u32 2147483648, %v1780_v38 }
 0x3ec   : > { %v1897_v18 = vsub.f32 1.0, %v1896_v21  ;;  %v1894_v20 = vmul.f32 %v3953_v55, %v1893_v47  ;;  %v1919_v2 = vand.u32 2147483647, %v1780_v38  ;;  %vm1915_vm5 = vweird.f32 %v1780_v38 }
 0x3ed   : > { %v1922_v26 = vor.u32 1.1754944e-38, %v1921_v29 }
 0x3ee   : > { %v1898_v52 = vmul.f32 %v3394_v15, %v1897_v18  ;;  %3235 = vmatmul.msk.f32.gmra.mxu2 %vm1235_vm6, %v1894_v20  ;;  %vm1920_vm8 = vcmp.eq.f32.partialorder %v1919_v2, 8.507059e+37 }
 0x3f0   : > { %v1899_v63 = vadd.f32 %v3394_v15, %v1898_v52 }
 0x3f1   : > { %v3398_v24 = vpop.eup %3397 }
 0x3f2   : > { %v1903_v40 = vsel %vm1902_vm2, %v3394_v15, %v1899_v63  ;;  %v1911_v44 = vmul.f32 %v3398_v24, %v1780_v38  ;;  %1785 = vadd.xlane.f32.xlu1 %v1784_v37  ;;  %vm1916_vm4 = vweird.f32 %v3398_v24  ;;  %v1783_v41 = vpop.xlane.xlu1 %1782 }
 0x3f3   : > { %v1908_v55 = vsel %vm1905_vm3, %v1907_v25, %v1903_v40  ;;  %vm1917_vm7 = vmor %vm1915_vm5, %vm1916_vm4  ;;  %3399 = vrcp.f32 %v1783_v41  ;;  %v1934_v9 = vand.u32 2147483647, %v1783_v41  ;;  %v1936_v36 = vand.u32 2147483648, %v1783_v41 }
 0x3f4   : > { %v1909_v27 = vmul.f32 %v3958_v61, %v1908_v55  ;;  %v1912_v28 = vsub.f32 1.0, %v1911_v44  ;;  %vm1930_vm10 = vweird.f32 %v1783_v41 }
 0x3f5   : > { %vm4075_vm12 = vcmp.eq.f32.partialorder %v1934_v9, 8.507059e+37  ;;  %v1937_v21 = vor.u32 1.1754944e-38, %v1936_v36 }
 0x3f6   : > { %v1913_v8 = vmul.f32 %v3398_v24, %v1912_v28  ;;  %3236 = vmatmul.msk.f32.vlgmr.msrb.gmra.mxu3 %vm1235_vm6, %v1909_v27 }
 0x3f8   : > { %v1914_v33 = vadd.f32 %v3398_v24, %v1913_v8 }
 0x3f9   : > { %v3400_v16 = vpop.eup %3399 }
 0x3fa   : > { %v1918_v34 = vsel %vm1917_vm7, %v3398_v24, %v1914_v33  ;;  %v1926_v51 = vmul.f32 %v3400_v16, %v1783_v41  ;;  %vm1931_vm9 = vweird.f32 %v3400_v16 }
 0x3fb   : > { %v1923_v11 = vsel %vm1920_vm8, %v1922_v26, %v1918_v34  ;;  %vm4071_vm11 = vmor %vm1930_vm10, %vm1931_vm9 }
 0x3fc   : > { %v1924_v49 = vmul.f32 %v3963_v3, %v1923_v11  ;;  %v1927_v30 = vsub.f32 1.0, %v1926_v51 }
 0x3fe   : > { %3237 = vmatmul.msk.f32.gmra.mxu3 %vm1235_vm6, %v1924_v49  ;;  %v1928_v59 = vmul.f32 %v3400_v16, %v1927_v30 }
 0x400   : > { %v1929_v10 = vadd.f32 %v3400_v16, %v1928_v59 }
 0x402   : > { %v4034_v61 = vpop.xlane.xlu1 %1788  ;;  %v1933_v42 = vsel %vm4071_vm11, %v3400_v16, %v1929_v10 }
 0x403   : > { %3401 = vrcp.f32 %v4034_v61  ;;  %vm1960_vm13 = vweird.f32 %v4034_v61  ;;  %v1964_v18 = vand.u32 2147483647, %v4034_v61  ;;  %v1966_v20 = vand.u32 2147483648, %v4034_v61 }
 0x404   : > { %v1938_v8 = vsel %vm4075_vm12, %v1937_v21, %v1933_v42 }
 0x405   : > { %v1967_v33 = vor.u32 1.1754944e-38, %v1966_v20  ;;  %vm1965_vm7 = vcmp.eq.f32.partialorder %v1964_v18, 8.507059e+37 }
 0x409   : > { %v4042_v39 = vpop.eup %3401 }
 0x40a   : > { %v1956_v56 = vmul.f32 %v4042_v39, %v4034_v61  ;;  %vm1961_vm14 = vweird.f32 %v4042_v39 }
 0x40b   : > { %vm4096_vm1 = vmor %vm1960_vm13, %vm1961_vm14 }
 0x40c   : > { %v1957_v0 = vsub.f32 1.0, %v1956_v56 }
 0x40e   : > { %v1958_v57 = vmul.f32 %v4042_v39, %v1957_v0 }
 0x410   : > { %v1959_v19 = vadd.f32 %v4042_v39, %v1958_v57  ;;  %v1939_v57 = vmul.f32 %v3969_v7, %v1938_v8 }
 0x412   : > { %v4036_v43 = vpop.xlane.xlu0 %1794  ;;  %v1963_v2 = vsel %vm4096_vm1, %v4042_v39, %v1959_v19 }
 0x413   : > { %3403 = vrcp.f32 %v4036_v43  ;;  %vm1990_vm2 = vweird.f32 %v4036_v43  ;;  %v1996_v37 = vand.u32 2147483648, %v4036_v43  ;;  %v1994_v27 = vand.u32 2147483647, %v4036_v43 }
 0x414   : > { %v1968_v51 = vsel %vm1965_vm7, %v1967_v33, %v1963_v2  ;;  %vm2339_vm7 = vcmask 1041409  }
 0x415   : > { %v1997_v61 = vor.u32 1.1754944e-38, %v1996_v37  ;;  %vm1995_vm8 = vcmp.eq.f32.partialorder %v1994_v27, 8.507059e+37 }
 0x419   : > { %v4044_v53 = vpop.eup %3403 }
 0x41a   : > { %v4040_v48 = vpop.xlane.xlu2 %1797  ;;  %v1986_v58 = vmul.f32 %v4044_v53, %v4036_v43  ;;  %vm1991_vm15 = vweird.f32 %v4044_v53 }
 0x41b   : > { %vm4105_vm3 = vmor %vm1990_vm2, %vm1991_vm15  ;;  %vm2005_vm9 = vweird.f32 %v4040_v48  ;;  %v2011_v56 = vand.u32 2147483648, %v4040_v48 }
 0x41c   : > { %v1987_v50 = vsub.f32 1.0, %v1986_v58 }
 0x41e   : > { %v1988_v14 = vmul.f32 %v4044_v53, %v1987_v50 }
 0x420   : > { %v1989_v52 = vadd.f32 %v4044_v53, %v1988_v14  ;;  %v1969_v14 = vmul.f32 %v3974_v13, %v1968_v51 }
 0x422   : > { %v4046_v3 = vpop.xlane.xlu1 %1800  ;;  %v4054_v45 = vpop.xlane.xlu2 %1791  ;;  %v1993_v34 = vsel %vm4105_vm3, %v4044_v53, %v1989_v52  ;;  %v2009_v53 = vand.u32 2147483647, %v4040_v48 }
 0x423   : > { %3405 = vrcp.f32 %v4046_v3  ;;  %v2026_v40 = vand.u32 2147483648, %v4046_v3  ;;  %vm2020_vm4 = vweird.f32 %v4046_v3  ;;  %v2024_v28 = vand.u32 2147483647, %v4046_v3 }
 0x424   : > { %3407 = vrcp.f32 %v4040_v48  ;;  %v1998_v39 = vsel %vm1995_vm8, %v1997_v61, %v1993_v34  ;;  %vm4152_vm15 = vcmp.eq.f32.partialorder %v2009_v53, 8.507059e+37  ;;  %v1981_v42 = vand.u32 2147483648, %v4054_v45 }
 0x425   : > { %3409 = vrcp.f32 %v4054_v45  ;;  %v2027_v43 = vor.u32 1.1754944e-38, %v2026_v40  ;;  %vm2025_vm10 = vcmp.eq.f32.partialorder %v2024_v28, 8.507059e+37  ;;  %v1999_v9 = vmul.f32 %v3980_v23, %v1998_v39 }
 0x426   : > { %vm1975_vm3 = vweird.f32 %v4054_v45 }
 0x429   : > { %v4056_v62 = vpop.eup %3405 }
 0x42a   : > { %v2016_v1 = vmul.f32 %v4056_v62, %v4046_v3  ;;  %v4061_v4 = vpop.xlane.xlu0 %1803  ;;  %v4063_v6 = vpop.eup %3407  ;;  %vm2021_vm0 = vweird.f32 %v4056_v62 }
 0x42b   : > { %3411 = vrcp.f32 %v4061_v4  ;;  %v2001_v60 = vmul.f32 %v4063_v6, %v4040_v48  ;;  %v4079_v38 = vpop.eup %3409  ;;  %vm4119_vm5 = vmor %vm2020_vm4, %vm2021_vm0  ;;  %vm2006_vm11 = vweird.f32 %v4063_v6  ;;  %v2041_v0 = vand.u32 2147483648, %v4061_v4  ;;  %v3343_v48 = vpop.permute.xlu2 %3342 }
 0x42c   : > { %v2017_v12 = vsub.f32 1.0, %v2016_v1  ;;  %v1971_v44 = vmul.f32 %v4079_v38, %v4054_v45  ;;  %vm4143_vm13 = vmor %vm2005_vm9, %vm2006_vm11  ;;  %vm2035_vm14 = vweird.f32 %v4061_v4  ;;  %vm1976_vm1 = vweird.f32 %v4079_v38 }
 0x42d   : > { %v2002_v22 = vsub.f32 1.0, %v2001_v60  ;;  %v2042_v21 = vor.u32 1.1754944e-38, %v2041_v0  ;;  %v3345_v18 = vunpack.i.h.bf16 %v3343_v48  ;;  %v3344_v19 = vunpack.i.l.bf16 %v3343_v48  ;;  %vm1977_vm4 = vmor %vm1975_vm3, %vm1976_vm1 }
 0x42e   : > { %v2018_v54 = vmul.f32 %v4056_v62, %v2017_v12  ;;  %v1972_v16 = vsub.f32 1.0, %v1971_v44  ;;  %v2039_v12 = vand.u32 2147483647, %v4061_v4  ;;  %vm2357_vm1 = vcmask 1047559  }
 0x42f   : > { %v2003_v11 = vmul.f32 %v4063_v6, %v2002_v22  ;;  %v1982_v22 = vor.u32 1.1754944e-38, %v1981_v42  ;;  %v3246_v42 = vld [vmem:[%s4605_s4 + $0x10] sm:$0xff] }
 0x430   : > { %v2019_v63 = vadd.f32 %v4056_v62, %v2018_v54  ;;  %vm2040_vm2 = vcmp.eq.f32.partialorder %v2039_v12, 8.507059e+37 }
 0x431   : > { %v4086_v47 = vpop.eup %3411  ;;  %v2004_v30 = vadd.f32 %v4063_v6, %v2003_v11 }
 0x432   : > { %v2031_v24 = vmul.f32 %v4086_v47, %v4061_v4  ;;  %v2023_v49 = vsel %vm4119_vm5, %v4056_v62, %v2019_v63  ;;  %vm2036_vm12 = vweird.f32 %v4086_v47  ;;  %v1973_v62 = vmul.f32 %v4079_v38, %v1972_v16 }
 0x433   : > { %v2028_v3 = vsel %vm2025_vm10, %v2027_v43, %v2023_v49  ;;  %vm4156_vm0 = vmor %vm2035_vm14, %vm2036_vm12  ;;  %v2008_v7 = vsel %vm4143_vm13, %v4063_v6, %v2004_v30  ;;  %v2012_v4 = vor.u32 1.1754944e-38, %v2011_v56  ;;  %v1979_v6 = vand.u32 2147483647, %v4054_v45 }
 0x434   : > { %v2032_v29 = vsub.f32 1.0, %v2031_v24  ;;  %v2029_v10 = vmul.f32 %v3993_v32, %v2028_v3  ;;  %v1974_v17 = vadd.f32 %v4079_v38, %v1973_v62  ;;  %vm2342_vm12 = vcmask 1042434  }
 0x435   : > { %vm1980_vm5 = vcmp.eq.f32.partialorder %v1979_v6, 8.507059e+37  ;;  %vm2345_vm13 = vcmask 1043459   ;;  %v3253_v6 = vld [vmem:[%s4605_s4 + $0x30] sm:$0xff]  ;;  %vm2348_vm14 = vcmask 1044484  }
 0x436   : > { %v2033_v41 = vmul.f32 %v4086_v47, %v2032_v29  ;;  %v1978_v52 = vsel %vm1977_vm4, %v4079_v38, %v1974_v17  ;;  %v3251_v17 = vld [vmem:[%s4605_s4 + $0x28] sm:$0xff] }
 0x437   : > { %v1983_v45 = vsel %vm1980_vm5, %v1982_v22, %v1978_v52  ;;  %v3263_v52 = vld [vmem:[%s4605_s4 + $0x68] sm:$0xff]  ;;  %v3266_v22 = vld [vmem:[%s4605_s4 + $0x78] sm:$0xff] }
 0x438   : > { %v2034_v58 = vadd.f32 %v4086_v47, %v2033_v41  ;;  %v1984_v25 = vmul.f32 %v3990_v31, %v1983_v45  ;;  %v3262_v45 = vld [vmem:[%s4605_s4 + $0x60] sm:$0xff] }
 0x43a   : > { %v3333_v59 = vpop.permute.xlu1 %3332  ;;  %v2038_v13 = vsel %vm4156_vm0, %v4086_v47, %v2034_v58  ;;  %v2013_v47 = vsel %vm4152_vm15, %v2012_v4, %v2008_v7  ;;  %v2326_v4 = vld [vmem:[%s4605_s4 + $0x8] sm:$0xff]  ;;  %vm2351_vm15 = vcmask 1045509   ;;  %vm2354_vm0 = vcmask 1046534  }
 0x43b   : > { %v3335_v50 = vunpack.i.h.bf16 %v3333_v59  ;;  %v3334_v1 = vunpack.i.l.bf16 %v3333_v59  ;;  %v2043_v20 = vsel %vm2040_vm2, %v2042_v21, %v2038_v13  ;;  %v2014_v63 = vmul.f32 %v3986_v5, %v2013_v47  ;;  %v3247_v13 = vld [vmem:[%s4605_s4 + $0x18] sm:$0xff]  ;;  %v3257_v47 = vld [vmem:[%s4605_s4 + $0x48] sm:$0xff] }
 0x43c   : > { %v2044_v24 = vmul.f32 %v3999_v35, %v2043_v20  ;;  %v3254_v21 = vld [vmem:[%s4605_s4 + $0x38] sm:$0xff] }
 0x43d   : > { %v3338_v54 = vpop.permute.xlu0 %3337  ;;  %2282 = vmatpush.msrb.mxu2 %v3334_v1  ;;  %2317 = vmatpush.msra.mxu3 %v3335_v50  ;;  %v3260_v20 = vld [vmem:[%s4605_s4 + $0x58] sm:$0xff] }
 0x43e   : > { %v3340_v32 = vunpack.i.h.bf16 %v3338_v54  ;;  %v3339_v15 = vunpack.i.l.bf16 %v3338_v54  ;;  %3242 = vmatmul.msk.f32.vlgmr.msrb.gmra.mxu2 %vm1235_vm6, %v1999_v9  ;;  %3244 = vmatmul.msk.f32.vlgmr.msra.gmra.mxu3 %vm1235_vm6, %v2029_v10 }
 0x43f   : > { %2450 = vmatpush.msra.mxu2 %v3251_v17  ;;  %2490 = vmatpush.msrb.mxu3 %v3254_v21 }
 0x440   : > { %2211 = vmatpush.msrb.mxu0 %v3339_v15  ;;  %2246 = vmatpush.msrb.mxu1 %v3340_v32 }
 0x441   : > { %2491 = vmatpush.msrb.mxu3 %v3253_v6 }
 0x442   : > { %2212 = vmatpush.msrb.mxu0 %v3344_v19  ;;  %2247 = vmatpush.msrb.mxu1 %v3345_v18  ;;  %v2325_v18 = vld [vmem:[%s4605_s4] sm:$0xff] }
 0x443   : > { %3238 = vmatmul.msk.f32.vlgmr.msrb.gmra.mxu0 %vm1235_vm6, %v1939_v57  ;;  %3240 = vmatmul.msk.f32.vlgmr.msrb.gmra.mxu1 %vm1235_vm6, %v1969_v14  ;;  %v4184_v37 = vpop.f32.mrf.mxu0  ;;  %v3250_v19 = vld [vmem:[%s4605_s4 + $0x20] sm:$0xff] }
 0x444   : > { %2375 = vmatpush.msra.mxu0 %v3247_v13  ;;  %2411 = vmatpush.msra.mxu1 %v2326_v4 }
 0x445   : > { %2451 = vmatpush.msra.mxu2 %v3250_v19  ;;  %2650 = vmatpush.msra.mxu3 %v3266_v22 }
 0x446   : > { %3243 = vmatmul.msk.f32.gmra.mxu2 %vm1235_vm6, %v2014_v63  ;;  %3245 = vmatmul.msk.f32.gmra.mxu3 %vm1235_vm6, %v2044_v24  ;;  %v3256_v63 = vld [vmem:[%s4605_s4 + $0x40] sm:$0xff]  ;;  %v3259_v24 = vld [vmem:[%s4605_s4 + $0x50] sm:$0xff] }
 0x447   : > { %2376 = vmatpush.msra.mxu0 %v3246_v42  ;;  %2412 = vmatpush.msra.mxu1 %v2325_v18 }
 0x448   : > { %2610 = vmatpush.msrb.mxu2 %v3263_v52 }
 0x449   : > { %2530 = vmatpush.msrb.mxu0 %v3257_v47  ;;  %2570 = vmatpush.msrb.mxu1 %v3260_v20 }
 0x44a   : > { %2611 = vmatpush.msrb.mxu2 %v3262_v45 }
 0x44b   : > { %3241 = vmatmul.msk.f32.gmra.mxu1 %vm1235_vm6, %v1984_v25  ;;  %v4188_v38 = vpop.f32.mrf.mxu0  ;;  %v3265_v25 = vld [vmem:[%s4605_s4 + $0x70] sm:$0xff]  ;;  %2531 = vmatpush.msrb.mxu0 %v3256_v63 }
 0x44c   : > { %v2828_v5 = vrot.slane %v4188_v38, 4  ;;  %v2868_v35 = vrot.slane %v4188_v38, 5  ;;  %v2908_v55 = vrot.slane %v4188_v38, 6  ;;  %v2948_v27 = vrot.slane %v4188_v38, 7  ;;  %2571 = vmatpush.msrb.mxu1 %v3259_v24  ;;  %2651 = vmatpush.msra.mxu3 %v3265_v25 }
 0x453   : > { %v4186_v40 = vpop.f32.mrf.mxu1 }
 0x45b   : > { %v4190_v44 = vpop.f32.mrf.mxu1 }
 0x45c   : > { %v2829_v31 = vrot.slane %v4190_v44, 3  ;;  %v2869_v28 = vrot.slane %v4190_v44, 4  ;;  %v2909_v29 = vrot.slane %v4190_v44, 5  ;;  %v2949_v8 = vrot.slane %v4190_v44, 6 }
 0x45e   : > { %v2830_v2 = vsel %vm2339_vm7, %v2829_v31, %v2828_v5  ;;  %v2870_v33 = vsel %vm2339_vm7, %v2869_v28, %v2868_v35  ;;  %v2910_v26 = vsel %vm2339_vm7, %v2909_v29, %v2908_v55  ;;  %v2950_v34 = vsel %vm2339_vm7, %v2949_v8, %v2948_v27 }
 0x45f   : > { %v2381_v5 = vrot.slane %v4186_v40, 7  ;;  %v2421_v35 = vrot.slane %v4186_v40, 1  ;;  %v2461_v55 = vrot.slane %v4186_v40, 2  ;;  %v2501_v27 = vrot.slane %v4186_v40, 3 }
 0x460   : > { %v2338_v31 = vrot.slane %v4184_v37, 1  ;;  %v2420_v28 = vrot.slane %v4184_v37, 2  ;;  %v2541_v29 = vrot.slane %v4186_v40, 4  ;;  %v2460_v8 = vrot.slane %v4184_v37, 3 }
 0x465   : > { %v1786_v11 = vpop.xlane.xlu1 %1785 }
 0x466   : > { %3413 = vrcp.f32 %v1786_v11  ;;  %v1951_v16 = vand.u32 2147483648, %v1786_v11  ;;  %v1949_v39 = vand.u32 2147483647, %v1786_v11  ;;  %vm1945_vm9 = vweird.f32 %v1786_v11 }
 0x468   : > { %v1952_v30 = vor.u32 1.1754944e-38, %v1951_v16  ;;  %vm1950_vm11 = vcmp.eq.f32.partialorder %v1949_v39, 8.507059e+37  ;;  %v2422_v16 = vsel %vm2339_vm7, %v2421_v35, %v2420_v28 }
 0x469   : > { %v4204_v49 = vpop.f32.mrf.mxu2 }
 0x46c   : > { %v3414_v41 = vpop.eup %3413 }
 0x46d   : > { %v1941_v61 = vmul.f32 %v3414_v41, %v1786_v11  ;;  %vm1946_vm8 = vweird.f32 %v3414_v41  ;;  %v2340_v11 = vsel %vm2339_vm7, %v4186_v40, %v2338_v31 }
 0x46e   : > { %vm1947_vm10 = vmor %vm1945_vm9, %vm1946_vm8 }
 0x46f   : > { %v1942_v43 = vsub.f32 1.0, %v1941_v61  ;;  %v2621_v61 = vrot.slane %v4186_v40, 6 }
 0x471   : > { %v1943_v51 = vmul.f32 %v3414_v41, %v1942_v43  ;;  %v4206_v53 = vpop.f32.mrf.mxu2  ;;  %v2382_v43 = vsel %vm2339_vm7, %v2381_v5, %v4184_v37 }
 0x472   : > { %v2831_v56 = vrot.slane %v4206_v53, 2  ;;  %v2871_v58 = vrot.slane %v4206_v53, 3  ;;  %v2911_v59 = vrot.slane %v4206_v53, 4  ;;  %v2951_v62 = vrot.slane %v4206_v53, 5 }
 0x473   : > { %v1944_v3 = vadd.f32 %v3414_v41, %v1943_v51  ;;  %v2462_v51 = vsel %vm2339_vm7, %v2461_v55, %v2460_v8 }
 0x474   : > { %v2832_v1 = vsel %vm2342_vm12, %v2831_v56, %v2830_v2  ;;  %v2872_v9 = vsel %vm2342_vm12, %v2871_v58, %v2870_v33  ;;  %v2912_v10 = vsel %vm2342_vm12, %v2911_v59, %v2910_v26  ;;  %v2952_v12 = vsel %vm2342_vm12, %v2951_v62, %v2950_v34 }
 0x475   : > { %v1948_v0 = vsel %vm1947_vm10, %v3414_v41, %v1944_v3  ;;  %v2500_v2 = vrot.slane %v4184_v37, 4  ;;  %v2540_v33 = vrot.slane %v4184_v37, 5  ;;  %v2580_v26 = vrot.slane %v4184_v37, 6 }
 0x476   : > { %v1953_v50 = vsel %vm1950_vm11, %v1952_v30, %v1948_v0  ;;  %v2620_v34 = vrot.slane %v4184_v37, 7  ;;  %v2581_v41 = vrot.slane %v4186_v40, 5  ;;  %v2341_v3 = vrot.slane %v4204_v49, 7 }
 0x477   : > { %v1954_v36 = vmul.f32 %v4025_v46, %v1953_v50  ;;  %v2502_v39 = vsel %vm2339_vm7, %v2501_v27, %v2500_v2  ;;  %v2383_v30 = vrot.slane %v4204_v49, 6  ;;  %v2463_v56 = vrot.slane %v4204_v49, 1 }
 0x478   : > { %v2542_v58 = vsel %vm2339_vm7, %v2541_v29, %v2540_v33  ;;  %v2503_v59 = vrot.slane %v4204_v49, 2  ;;  %v2543_v40 = vrot.slane %v4204_v49, 3  ;;  %v2583_v37 = vrot.slane %v4204_v49, 4 }
 0x479   : > { %v4217_v57 = vpop.f32.mrf.mxu3  ;;  %3239 = vmatmul.msk.f32.gmra.mxu0 %vm1235_vm6, %v1954_v36  ;;  %v2623_v62 = vrot.slane %v4204_v49, 5  ;;  %v2464_v13 = vsel %vm2342_vm12, %v2463_v56, %v2462_v51 }
 0x47a   : > { %v2344_v0 = vrot.slane %v4217_v57, 6  ;;  %v2385_v50 = vrot.slane %v4217_v57, 5  ;;  %v2424_v36 = vrot.slane %v4217_v57, 7  ;;  %v2504_v4 = vsel %vm2342_vm12, %v2503_v59, %v2502_v39 }
 0x47b   : > { %v2544_v17 = vsel %vm2342_vm12, %v2543_v40, %v2542_v58  ;;  %v2625_v18 = vrot.slane %v4217_v57, 4  ;;  %v2465_v47 = vsel %vm2345_vm13, %v4217_v57, %v2464_v13 }
 0x481   : > { %v4220_v14 = vpop.f32.mrf.mxu3 }
 0x482   : > { %v2833_v60 = vrot.slane %v4220_v14, 1  ;;  %v2873_v23 = vrot.slane %v4220_v14, 2  ;;  %v2913_v48 = vrot.slane %v4220_v14, 3  ;;  %v2953_v54 = vrot.slane %v4220_v14, 4 }
 0x484   : > { %v4227_v46 = vsel %vm2345_vm13, %v2833_v60, %v2832_v1  ;;  %v4230_v32 = vsel %vm2345_vm13, %v2873_v23, %v2872_v9  ;;  %v4233_v15 = vsel %vm2345_vm13, %v2913_v48, %v2912_v10  ;;  %v4236_v7 = vsel %vm2345_vm13, %v2953_v54, %v2952_v12 }
 0x485   : > { %v2582_v1 = vsel %vm2339_vm7, %v2581_v41, %v2580_v26  ;;  %v2622_v9 = vsel %vm2339_vm7, %v2621_v61, %v2620_v34  ;;  %v2505_v10 = vrot.slane %v4217_v57, 1  ;;  %v2545_v12 = vrot.slane %v4217_v57, 2 }
 0x486   : > { %v2585_v60 = vrot.slane %v4217_v57, 3  ;;  %v2343_v23 = vsel %vm2342_vm12, %v2341_v3, %v2340_v11  ;;  %v2384_v48 = vsel %vm2342_vm12, %v2383_v30, %v2382_v43  ;;  %v2423_v54 = vsel %vm2342_vm12, %v4204_v49, %v2422_v16 }
 0x487   : > { %v2584_v21 = vsel %vm2342_vm12, %v2583_v37, %v2582_v1  ;;  %v2624_v42 = vsel %vm2342_vm12, %v2623_v62, %v2622_v9  ;;  %v2346_v19 = vsel %vm2345_vm13, %v2344_v0, %v2343_v23  ;;  %v2386_v6 = vsel %vm2345_vm13, %v2385_v50, %v2384_v48 }
 0x488   : > { %v2425_v49 = vsel %vm2345_vm13, %v2424_v36, %v2423_v54  ;;  %v2506_v20 = vsel %vm2345_vm13, %v2505_v10, %v2504_v4  ;;  %v2546_v52 = vsel %vm2345_vm13, %v2545_v12, %v2544_v17  ;;  %v4341_v22 = vsel %vm2345_vm13, %v2585_v60, %v2584_v21 }
 0x489   : > { %v2626_v13 = vsel %vm2345_vm13, %v2625_v18, %v2624_v42 }
 0x4c0   : > { %v4343_v63 = vpop.f32.mrf.mxu0  ;;  %v4345_v24 = vpop.f32.mrf.mxu1 }
 0x4c1   : > { %v4347_v45 = vpop.f32.mrf.mxu2  ;;  %v4349_v57 = vpop.f32.mrf.mxu3  ;;  %v2347_v25 = vrot.slane %v4343_v63, 5  ;;  %v2350_v5 = vrot.slane %v4345_v24, 4  ;;  %v2387_v35 = vrot.slane %v4343_v63, 4  ;;  %v2389_v55 = vrot.slane %v4345_v24, 3 }
 0x4c2   : > { %v2353_v27 = vrot.slane %v4347_v45, 3  ;;  %v2356_v31 = vrot.slane %v4349_v57, 2  ;;  %v2391_v28 = vrot.slane %v4347_v45, 2  ;;  %v2393_v29 = vrot.slane %v4349_v57, 1 }
 0x4c3   : > { %v2349_v8 = vsel %vm2348_vm14, %v2347_v25, %v2346_v19  ;;  %v2388_v2 = vsel %vm2348_vm14, %v2387_v35, %v2386_v6  ;;  %v2426_v33 = vrot.slane %v4343_v63, 6  ;;  %v2428_v26 = vrot.slane %v4345_v24, 5 }
 0x4c4   : > { %v2352_v34 = vsel %vm2351_vm15, %v2350_v5, %v2349_v8  ;;  %v2390_v11 = vsel %vm2351_vm15, %v2389_v55, %v2388_v2  ;;  %v2430_v41 = vrot.slane %v4347_v45, 4  ;;  %v2432_v61 = vrot.slane %v4349_v57, 3  ;;  %v3275_v8 = vld [vmem:[%s4605_s4 + $0xa8] sm:$0xff]  ;;  %v3268_v2 = vld [vmem:[%s4605_s4 + $0x80] sm:$0xff] }
 0x4c5   : > { %v2355_v43 = vsel %vm2354_vm0, %v2353_v27, %v2352_v34  ;;  %v2392_v16 = vsel %vm2354_vm0, %v2391_v28, %v2390_v11  ;;  %v2427_v51 = vsel %vm2348_vm14, %v2426_v33, %v2425_v49  ;;  %v2466_v39 = vrot.slane %v4343_v63, 7  ;;  %v3271_v33 = vld [vmem:[%s4605_s4 + $0x90] sm:$0xff]  ;;  %v3281_v11 = vld [vmem:[%s4605_s4 + $0xc8] sm:$0xff] }
 0x4c6   : > { %v2358_v3 = vsel %vm2357_vm1, %v2356_v31, %v2355_v43  ;;  %v2394_v30 = vsel %vm2357_vm1, %v2393_v29, %v2392_v16  ;;  %v2429_v56 = vsel %vm2351_vm15, %v2428_v26, %v2427_v51  ;;  %v2468_v58 = vrot.slane %v4345_v24, 6  ;;  %v3269_v29 = vld [vmem:[%s4605_s4 + $0x88] sm:$0xff]  ;;  %v3274_v26 = vld [vmem:[%s4605_s4 + $0xa0] sm:$0xff]  ;;  %v3277_v34 = vld [vmem:[%s4605_s4 + $0xb0] sm:$0xff] }
 0x4c7   : > { %3248 = vmatmul.msk.f32.vlgmr.msra.gmra.mxu0 %vm1235_vm6, %v2358_v3  ;;  %3249 = vmatmul.msk.f32.vlgmr.msra.gmra.mxu1 %vm1235_vm6, %v2394_v30  ;;  %v2431_v59 = vsel %vm2354_vm0, %v2430_v41, %v2429_v56  ;;  %v2467_v40 = vsel %vm2348_vm14, %v2466_v39, %v2465_v47  ;;  %v2470_v37 = vrot.slane %v4347_v45, 5  ;;  %v2472_v62 = vrot.slane %v4349_v57, 4  ;;  %v3284_v41 = vld [vmem:[%s4605_s4 + $0xd8] sm:$0xff]  ;;  %v3280_v16 = vld [vmem:[%s4605_s4 + $0xc0] sm:$0xff]  ;;  %v3283_v51 = vld [vmem:[%s4605_s4 + $0xd0] sm:$0xff] }
 0x4c8   : > { %v2433_v0 = vsel %vm2357_vm1, %v2432_v61, %v2431_v59  ;;  %v2469_v50 = vsel %vm2351_vm15, %v2468_v58, %v2467_v40  ;;  %v2507_v1 = vsel %vm2348_vm14, %v4343_v63, %v2506_v20  ;;  %v2508_v9 = vrot.slane %v4345_v24, 7  ;;  %2698 = vmatpush.msra.mxu0 %v3269_v29  ;;  %v3287_v61 = vld [vmem:[%s4605_s4 + $0xe8] sm:$0xff]  ;;  %v3290_v43 = vld [vmem:[%s4605_s4 + $0xf8] sm:$0xff]  ;;  %v3286_v39 = vld [vmem:[%s4605_s4 + $0xe0] sm:$0xff] }
 0x4c9   : > { %3252 = vmatmul.msk.f32.vlgmr.msra.gmra.mxu2 %vm1235_vm6, %v2433_v0  ;;  %v2471_v36 = vsel %vm2354_vm0, %v2470_v37, %v2469_v50  ;;  %v2510_v10 = vrot.slane %v4347_v45, 6  ;;  %v2512_v12 = vrot.slane %v4349_v57, 5  ;;  %v2547_v60 = vrot.slane %v4343_v63, 1  ;;  %v3289_v3 = vld [vmem:[%s4605_s4 + $0xf0] sm:$0xff] }
 0x4ca   : > { %v2473_v23 = vsel %vm2357_vm1, %v2472_v62, %v2471_v36  ;;  %v2509_v48 = vsel %vm2351_vm15, %v2508_v9, %v2507_v1  ;;  %v2550_v54 = vrot.slane %v4347_v45, 7  ;;  %v2587_v21 = vrot.slane %v4343_v63, 2  ;;  %2778 = vmatpush.msra.mxu2 %v3275_v8  ;;  %2699 = vmatpush.msra.mxu0 %v3268_v2 }
 0x4cb   : > { %3255 = vmatmul.msk.f32.vlgmr.msrb.gmra.mxu3 %vm1235_vm6, %v2473_v23  ;;  %v2511_v4 = vsel %vm2354_vm0, %v2510_v10, %v2509_v48  ;;  %v2548_v17 = vsel %vm2348_vm14, %v2547_v60, %v2546_v52  ;;  %v2589_v19 = vrot.slane %v4345_v24, 1  ;;  %v2552_v49 = vrot.slane %v4349_v57, 6  ;;  %v4485_v10 = vpop.f32.mrf.mxu1  ;;  %v4490_v23 = vpop.f32.mrf.mxu2 }
 0x4cc   : > { %v2513_v6 = vsel %vm2357_vm1, %v2512_v12, %v2511_v4  ;;  %v2549_v47 = vsel %vm2351_vm15, %v4345_v24, %v2548_v17  ;;  %v2627_v20 = vrot.slane %v4343_v63, 3  ;;  %v2588_v18 = vsel %vm2348_vm14, %v2587_v21, %v4341_v22  ;;  %2779 = vmatpush.msra.mxu2 %v3274_v26  ;;  %v4492_v48 = vpop.f32.mrf.mxu3 }
 0x4cd   : > { %v2551_v42 = vsel %vm2354_vm0, %v2550_v54, %v2549_v47  ;;  %v2629_v52 = vrot.slane %v4345_v24, 2  ;;  %v2631_v25 = vrot.slane %v4347_v45, 1  ;;  %v2590_v35 = vsel %vm2351_vm15, %v2589_v19, %v2588_v18 }
 0x4ce   : > { %v2553_v5 = vsel %vm2357_vm1, %v2552_v49, %v2551_v42  ;;  %v2592_v55 = vrot.slane %v4349_v57, 7  ;;  %v2628_v27 = vsel %vm2348_vm14, %v2627_v20, %v2626_v13  ;;  %v2591_v63 = vsel %vm2354_vm0, %v4347_v45, %v2590_v35  ;;  %v3272_v45 = vld [vmem:[%s4605_s4 + $0x98] sm:$0xff] }
 0x4cf   : > { %3258 = vmatmul.msk.f32.vlgmr.msrb.gmra.mxu0 %vm1235_vm6, %v2513_v6  ;;  %3261 = vmatmul.msk.f32.vlgmr.msrb.gmra.mxu1 %vm1235_vm6, %v2553_v5  ;;  %v2630_v22 = vsel %vm2351_vm15, %v2629_v52, %v2628_v27  ;;  %v2789_v30 = vrot.slane %v4190_v44, 2  ;;  %v2668_v56 = vrot.slane %v4190_v44, 7  ;;  %v2749_v58 = vrot.slane %v4190_v44, 1 }
 0x4d0   : > { %v2593_v24 = vsel %vm2357_vm1, %v2592_v55, %v2591_v63  ;;  %v2632_v31 = vsel %vm2354_vm0, %v2631_v25, %v2630_v22  ;;  %2738 = vmatpush.msra.mxu1 %v3272_v45  ;;  %2858 = vmatpush.msrb.mxu0 %v3281_v11  ;;  %v2791_v59 = vrot.slane %v4206_v53, 1  ;;  %v2708_v40 = vrot.slane %v4188_v38, 1 }
 0x4d1   : > { %3264 = vmatmul.msk.f32.vlgmr.msrb.gmra.mxu2 %vm1235_vm6, %v2593_v24  ;;  %v2633_v28 = vsel %vm2357_vm1, %v4349_v57, %v2632_v31  ;;  %v3278_v57 = vld [vmem:[%s4605_s4 + $0xb8] sm:$0xff]  ;;  %v2788_v37 = vrot.slane %v4188_v38, 3  ;;  %v2670_v62 = vrot.slane %v4206_v53, 6  ;;  %v2710_v0 = vrot.slane %v4206_v53, 7 }
 0x4d2   : > { %2818 = vmatpush.msrb.mxu3 %v3278_v57  ;;  %2739 = vmatpush.msra.mxu1 %v3271_v33  ;;  %v2748_v50 = vrot.slane %v4188_v38, 2  ;;  %v2672_v1 = vrot.slane %v4220_v14, 5  ;;  %v2712_v9 = vrot.slane %v4220_v14, 6  ;;  %v2752_v36 = vrot.slane %v4220_v14, 7 }
 0x4d3   : > { %3267 = vmatmul.msk.f32.vlgmr.msra.gmra.mxu3 %vm1235_vm6, %v2633_v28  ;;  %2938 = vmatpush.msrb.mxu2 %v3287_v61  ;;  %v2790_v12 = vsel %vm2339_vm7, %v2789_v30, %v2788_v37  ;;  %v2709_v60 = vsel %vm2339_vm7, %v4190_v44, %v2708_v40  ;;  %v2669_v54 = vsel %vm2339_vm7, %v2668_v56, %v4188_v38  ;;  %v2676_v47 = vrot.slane %v4485_v10, 3 }
 0x4d4   : > { %2819 = vmatpush.msrb.mxu3 %v3277_v34  ;;  %2898 = vmatpush.msrb.mxu1 %v3284_v41  ;;  %v2750_v13 = vsel %vm2339_vm7, %v2749_v58, %v2748_v50  ;;  %v2792_v4 = vsel %vm2342_vm12, %v2791_v59, %v2790_v12  ;;  %v2671_v17 = vsel %vm2342_vm12, %v2670_v62, %v2669_v54  ;;  %v2678_v20 = vrot.slane %v4490_v23, 2 }
 0x4d5   : > { %2859 = vmatpush.msrb.mxu0 %v3280_v16  ;;  %2939 = vmatpush.msrb.mxu2 %v3286_v39  ;;  %v2711_v21 = vsel %vm2342_vm12, %v2710_v0, %v2709_v60  ;;  %v2751_v19 = vsel %vm2342_vm12, %v4206_v53, %v2750_v13  ;;  %v2793_v44 = vsel %vm2345_vm13, %v4220_v14, %v2792_v4  ;;  %v2680_v42 = vrot.slane %v4492_v48, 1 }
 0x4d6   : > { %2978 = vmatpush.msra.mxu3 %v3290_v43  ;;  %2899 = vmatpush.msrb.mxu1 %v3283_v51  ;;  %v2673_v6 = vsel %vm2345_vm13, %v2672_v1, %v2671_v17  ;;  %v2713_v38 = vsel %vm2345_vm13, %v2712_v9, %v2711_v21  ;;  %v2753_v49 = vsel %vm2345_vm13, %v2752_v36, %v2751_v19  ;;  %v2716_v18 = vrot.slane %v4485_v10, 4 }
 0x4d7   : > { %v2718_v52 = vrot.slane %v4490_v23, 3  ;;  %v2720_v53 = vrot.slane %v4492_v48, 2  ;;  %v2756_v14 = vrot.slane %v4485_v10, 5  ;;  %v2758_v25 = vrot.slane %v4490_v23, 4 }
 0x4d8   : > { %2979 = vmatpush.msra.mxu3 %v3289_v3  ;;  %v2760_v5 = vrot.slane %v4492_v48, 3  ;;  %v2796_v55 = vrot.slane %v4485_v10, 6  ;;  %v2798_v27 = vrot.slane %v4490_v23, 5  ;;  %v2800_v63 = vrot.slane %v4492_v48, 4 }
 0x4d9   : > { %v2836_v22 = vrot.slane %v4485_v10, 7  ;;  %v2917_v62 = vrot.slane %v4485_v10, 1  ;;  %v2957_v1 = vrot.slane %v4485_v10, 2  ;;  %v2838_v9 = vrot.slane %v4490_v23, 6 }
 0x4da   : > { %v2959_v60 = vrot.slane %v4490_v23, 1  ;;  %v2840_v4 = vrot.slane %v4492_v48, 5  ;;  %v2920_v19 = vrot.slane %v4492_v48, 7 }
 0x4f6   : > { %v2217_v35 = vpop.f32.mrf.mxu0 }
 0x4f7   : > { %v2674_v24 = vrot.slane %v2217_v35, 4  ;;  %v2714_v31 = vrot.slane %v2217_v35, 5  ;;  %v2754_v28 = vrot.slane %v2217_v35, 6  ;;  %v2794_v29 = vrot.slane %v2217_v35, 7 }
 0x4f8   : > { %v2835_v45 = vsel %vm2348_vm14, %v2217_v35, %v4227_v46  ;;  %v2875_v8 = vrot.slane %v2217_v35, 1  ;;  %v2915_v57 = vrot.slane %v2217_v35, 2  ;;  %v2955_v2 = vrot.slane %v2217_v35, 3 }
 0x4f9   : > { %v2675_v33 = vsel %vm2348_vm14, %v2674_v24, %v2673_v6  ;;  %v2715_v26 = vsel %vm2348_vm14, %v2714_v31, %v2713_v38  ;;  %v2755_v34 = vsel %vm2348_vm14, %v2754_v28, %v2753_v49  ;;  %v2795_v11 = vsel %vm2348_vm14, %v2794_v29, %v2793_v44 }
 0x4fa   : > { %v2677_v41 = vsel %vm2351_vm15, %v2676_v47, %v2675_v33  ;;  %v2717_v61 = vsel %vm2351_vm15, %v2716_v18, %v2715_v26  ;;  %v2757_v43 = vsel %vm2351_vm15, %v2756_v14, %v2755_v34  ;;  %v2797_v16 = vsel %vm2351_vm15, %v2796_v55, %v2795_v11  ;;  %v2989_v55 = vld [vmem:[%s4606_s5 + $0x8] sm:$0xff] }
 0x4fb   : > { %v2679_v46 = vsel %vm2354_vm0, %v2678_v20, %v2677_v41  ;;  %v2719_v51 = vsel %vm2354_vm0, %v2718_v52, %v2717_v61  ;;  %v2759_v39 = vsel %vm2354_vm0, %v2758_v25, %v2757_v43  ;;  %v2799_v3 = vsel %vm2354_vm0, %v2798_v27, %v2797_v16  ;;  %v2991_v25 = vld [vmem:[%s4606_s5 + $0x18] sm:$0xff] }
 0x4fc   : > { %v2681_v30 = vsel %vm2357_vm1, %v2680_v42, %v2679_v46  ;;  %v2721_v56 = vsel %vm2357_vm1, %v2720_v53, %v2719_v51  ;;  %v2761_v58 = vsel %vm2357_vm1, %v2760_v5, %v2759_v39  ;;  %v2801_v59 = vsel %vm2357_vm1, %v2800_v63, %v2799_v3  ;;  %v2988_v63 = vld [vmem:[%s4606_s5] sm:$0xff] }
 0x4fd   : > { %3270 = vmatmul.msk.f32.vlgmr.msra.gmra.mxu0 %vm1235_vm6, %v2681_v30  ;;  %3273 = vmatmul.msk.f32.vlgmr.msra.gmra.mxu1 %vm1235_vm6, %v2721_v56  ;;  %v2876_v40 = vsel %vm2348_vm14, %v2875_v8, %v4230_v32  ;;  %v2916_v37 = vsel %vm2348_vm14, %v2915_v57, %v4233_v15  ;;  %v2837_v0 = vsel %vm2351_vm15, %v2836_v22, %v2835_v45  ;;  %v2878_v32 = vrot.slane %v4490_v23, 7  ;;  %v3349_v46 = vld [vmem:[%s4607_s6 + $0x3] ss:$0 sm:$0xff]  ;;  %v3350_v56 = vld [vmem:[%s4607_s6 + $0x4] ss:$0 sm:$0xff] }
 0x4fe   : > { %3276 = vmatmul.msk.f32.vlgmr.msra.gmra.mxu2 %vm1235_vm6, %v2761_v58  ;;  %3279 = vmatmul.msk.f32.vlgmr.msrb.gmra.mxu3 %vm1235_vm6, %v2801_v59  ;;  %v2877_v50 = vsel %vm2351_vm15, %v4485_v10, %v2876_v40  ;;  %v2918_v36 = vsel %vm2351_vm15, %v2917_v62, %v2916_v37  ;;  %v2956_v15 = vsel %vm2348_vm14, %v2955_v2, %v4236_v7  ;;  %v2880_v10 = vrot.slane %v4492_v48, 6 }
 0x4ff   : > { %v2958_v12 = vsel %vm2351_vm15, %v2957_v1, %v2956_v15  ;;  %v2839_v54 = vsel %vm2354_vm0, %v2838_v9, %v2837_v0  ;;  %v2879_v13 = vsel %vm2354_vm0, %v2878_v32, %v2877_v50  ;;  %v2919_v17 = vsel %vm2354_vm0, %v4490_v23, %v2918_v36  ;;  %3009 = vmatpush.msra.mxu0 %v2991_v25 }
 0x500   : > { %v2960_v21 = vsel %vm2354_vm0, %v2959_v60, %v2958_v12  ;;  %v2841_v7 = vsel %vm2357_vm1, %v2840_v4, %v2839_v54  ;;  %v2881_v44 = vsel %vm2357_vm1, %v2880_v10, %v2879_v13  ;;  %v2921_v6 = vsel %vm2357_vm1, %v2920_v19, %v2919_v17 }
 0x501   : > { %v2961_v47 = vsel %vm2357_vm1, %v4492_v48, %v2960_v21  ;;  %v2990_v48 = vld [vmem:[%s4606_s5 + $0x10] sm:$0xff] }
 0x502   : > { %3010 = vmatpush.msra.mxu0 %v2990_v48 }
 0x504   : > { %3011 = vmatpush.msra.mxu0 %v2989_v55 }
 0x505   : > { %3282 = vmatmul.msk.f32.vlgmr.msrb.gmra.mxu0 %vm1235_vm6, %v2841_v7  ;;  %3285 = vmatmul.msk.f32.vlgmr.msrb.gmra.mxu1 %vm1235_vm6, %v2881_v44 }
 0x506   : > { %3288 = vmatmul.msk.f32.vlgmr.msrb.gmra.mxu2 %vm1235_vm6, %v2921_v6  ;;  %3291 = vmatmul.msk.f32.vlgmr.msra.gmra.mxu3 %vm1235_vm6, %v2961_v47  ;;  %vm2993_vm6 = vcmask 261120  }
 0x507   : > { %3012 = vmatpush.msra.mxu0 %v2988_v63 }
 0x544   : > { %v2378_v23 = vpop.f32.mrf.mxu0  ;;  %v2414_v38 = vpop.f32.mrf.mxu1 }
 0x545   : > { %v2415_v20 = vadd.f32 %v2414_v38, %v2378_v23 }
 0x54c   : > { %v2453_v49 = vpop.f32.mrf.mxu2  ;;  %v2533_v53 = vpop.f32.mrf.mxu0 }
 0x54d   : > { %v2456_v42 = vadd.f32 %v2453_v49, %v2415_v20  ;;  %v2573_v5 = vpop.f32.mrf.mxu1 }
 0x54e   : > { %v2493_v18 = vpop.f32.mrf.mxu3 }
 0x54f   : > { %v2496_v52 = vadd.f32 %v2493_v18, %v2456_v42 }
 0x551   : > { %v2536_v14 = vadd.f32 %v2533_v53, %v2496_v52 }
 0x553   : > { %v2576_v35 = vadd.f32 %v2573_v5, %v2536_v14 }
 0x554   : > { %v2613_v27 = vpop.f32.mrf.mxu2 }
 0x555   : > { %v2616_v22 = vadd.f32 %v2613_v27, %v2576_v35 }
 0x556   : > { %v2653_v24 = vpop.f32.mrf.mxu3 }
 0x557   : > { %v2656_v31 = vadd.f32 %v2653_v24, %v2616_v22 }
 0x57a   : > { %v2701_v28 = vpop.f32.mrf.mxu0  ;;  %v2741_v45 = vpop.f32.mrf.mxu1 }
 0x57b   : > { %v2704_v29 = vadd.f32 %v2701_v28, %v2656_v31 }
 0x57d   : > { %v2744_v8 = vadd.f32 %v2741_v45, %v2704_v29 }
 0x581   : > { %v2781_v57 = vpop.f32.mrf.mxu2  ;;  %v2821_v2 = vpop.f32.mrf.mxu3 }
 0x582   : > { %v2784_v33 = vadd.f32 %v2781_v57, %v2744_v8  ;;  %v2861_v34 = vpop.f32.mrf.mxu0  ;;  %v2901_v41 = vpop.f32.mrf.mxu1 }
 0x584   : > { %v2824_v26 = vadd.f32 %v2821_v2, %v2784_v33 }
 0x586   : > { %v2864_v11 = vadd.f32 %v2861_v34, %v2824_v26 }
 0x588   : > { %v2904_v61 = vadd.f32 %v2901_v41, %v2864_v11 }
 0x589   : > { %v2941_v43 = vpop.f32.mrf.mxu2  ;;  %v2981_v51 = vpop.f32.mrf.mxu3 }
 0x58a   : > { %v2944_v16 = vadd.f32 %v2941_v43, %v2904_v61 }
 0x58c   : > { %v2984_v39 = vadd.f32 %v2981_v51, %v2944_v16 }
 0x58e   : > { %v2986_v3 = vadd.f32 %v3349_v46, %v2984_v39 }
 0x590   : > { %v2987_v30 = vmax.f32 %v2986_v3, 0.0 }
 0x592   : > { %3292 = vmatmul.msk.f32.vlgmr.msra.gmra.mxu0 %vm2993_vm6, %v2987_v30 }
 0x60f   : > { %v3014_v58 = vpop.f32.mrf.mxu0 }
 0x610   : > { %v3015_v59 = vadd.f32 %v3350_v56, %v3014_v58 }
 0x612   : > { %3017 = vst [vmem:[%s281_s29] sm:$0xff] %v3015_v59 }
 0x613 PF: > { %s17_s24 = sadd.s32 1, %s3421_s24  }
 0x614   : > { %p14_p5 = scmp.ge.s32.totalorder %s17_s24, 4  }
 0x616   :  { %16 = sbr.rel (!%p14_p5) target bundleno = 1 (0x1), region = 97 }

</bundles_post_ra>
